<compile_context>
chip_gen: v7x
topology: tpu7x:2x2x1
jax: 0.10.0
libtpu: 0.0.40
codegen_flags: <defaults>
</compile_context>

<pallas_src>
import numpy as np
import jax
import jax.numpy as jnp
from jax.experimental import pallas as pl
from jax.experimental.pallas import tpu as pltpu

EPS = 1e-5  # nn.InstanceNorm1d default eps


def _gelu(v):
    # tanh-approximate GELU: lowers to the EUP transcendental slot (essentially
    # free next to MXU/VPU work); within test tolerance of exact-erf nn.GELU().
    return jax.nn.gelu(v, approximate=True)


def _instance_norm(v):
    # InstanceNorm1d(affine=False): per-(b, c) statistics over L, biased variance.
    # Single pass: var = E[x^2] - mu^2 (one reduce sweep over (C, L) instead of two).
    inv_l = 1.0 / v.shape[-1]
    s = jnp.sum(v, axis=-1, keepdims=True)
    ss = jnp.sum(v * v, axis=-1, keepdims=True)
    mu = s * inv_l
    var = ss * inv_l - mu * mu
    return (v - mu) * jax.lax.rsqrt(var + EPS)


def denoiser_block_kernel(x_ref, ada_ref, t_mat_ref, w1t_ref, b1_ref,
                          w2t_ref, b2_ref, o_ref):
    C = x_ref.shape[1]

    x = x_ref[0]                       # (C, L) f32
    ada = ada_ref[0]                   # (6C, 1) f32, precomputed adaLN output
    shift_tm = ada[0 * C:1 * C]        # each (C, 1), broadcast against (C, L)
    scale_tm = ada[1 * C:2 * C]
    gate_tm = ada[2 * C:3 * C]
    shift_cm = ada[3 * C:4 * C]
    scale_cm = ada[4 * C:5 * C]
    gate_cm = ada[5 * C:6 * C]

    # ---- time-mixing branch (MXU) ---------------------------------------------
    y = _instance_norm(x)
    y = y * (1.0 + scale_tm) + shift_tm                           # (C, L)
    # FFTConv (bidirectional depthwise long conv + D skip) as per-channel Toeplitz
    # matvecs on the MXU:  y_tm[c, l] = sum_n T[c, l, n] * y[c, n]
    #                               == (y[c, :] @ T[c].T)[l]
    # One (1, L) x (L, L)^T matmul per channel (bf16 operands, f32 accumulation);
    # the (C, L, L) elementwise product is never materialized.
    y_b = y.astype(jnp.bfloat16)
    rows = [
        jax.lax.dot_general(
            y_b[c:c + 1, :], t_mat_ref[c],
            dimension_numbers=(((1,), (1,)), ((), ())),           # A @ B^T form
            preferred_element_type=jnp.float32)                   # (1, L) f32
        for c in range(C)
    ]
    y_tm = jnp.concatenate(rows, axis=0)                          # (C, L) f32
    y1 = x + gate_tm * _gelu(y_tm)                                # act1 = GELU

    # ---- channel-mixing branch (MXU, no activation transposes) ------------------
    y = _instance_norm(y1)
    y = y * (1.0 + scale_cm) + shift_cm                           # (C, L)
    h = _gelu(jnp.dot(w1t_ref[...], y.astype(jnp.bfloat16),
                      preferred_element_type=jnp.float32) + b1_ref[...])    # (2C, L)
    cm = jnp.dot(w2t_ref[...], h.astype(jnp.bfloat16),
                 preferred_element_type=jnp.float32) + b2_ref[...]          # (C, L)

    o_ref[0] = y1 + gate_cm * cm                                  # act2 = Identity


def denoiser_block(x, t_cond, w_ada, b_ada, T, w1, b1, w2, b2):
    B, C, L = x.shape

    # ---- host/XLA-side prep (cheap, once per call; pure layout plumbing) --------
    # adaLN hoisted out of the kernel: GELU(t_cond) @ w_ada + b_ada for all B.
    ada = jax.nn.gelu(t_cond, approximate=False) @ w_ada + b_ada     # (B, 6C)
    ada = ada.reshape(B, 6 * C, 1).astype(jnp.float32)
    # bf16 MXU operands; channel-mix weights pre-transposed so activations stay
    # (C, L) with L lane-dense inside the kernel; biases as (., 1) columns.
    t_mat = T.astype(jnp.bfloat16)                                   # (C, L, L)
    w1t = w1.T.astype(jnp.bfloat16)                                  # (2C, C)
    w2t = w2.T.astype(jnp.bfloat16)                                  # (C, 2C)
    b1c = b1.reshape(2 * C, 1).astype(jnp.float32)
    b2c = b2.reshape(C, 1).astype(jnp.float32)

    # Explicit VMEM budget: all blocks (worst case fully double-buffered) with
    # margin, clamped so the request is valid on v5e/v6e (128 MiB) and v7x (64 MiB).
    block_bytes = (2 * (C * L * 4)                                   # x
                   + 2 * (C * L * 4)                                 # out
                   + 2 * (6 * C * 4)                                 # ada
                   + 2 * (C * L * L * 2)                             # Toeplitz (bf16)
                   + 2 * (2 * C * C * 2 + 2 * C * 4                  # w1^T, b1
                          + C * 2 * C * 2 + C * 4))                  # w2^T, b2
    vmem_limit = int(min(max(2 * block_bytes, 32 * 1024 * 1024),
                         64 * 1024 * 1024))

    def run(single_buffer_weights):
        def weight_spec(shape):
            index_map = lambda b: (0,) * len(shape)
            if single_buffer_weights:
                # Grid-invariant blocks: double-buffering buys nothing; halve
                # their VMEM footprint.
                return pl.BlockSpec(shape, index_map,
                                    pipeline_mode=pl.Buffered(1))
            return pl.BlockSpec(shape, index_map)

        return pl.pallas_call(
            denoiser_block_kernel,
            out_shape=jax.ShapeDtypeStruct((B, C, L), jnp.float32),
            grid=(B,),
            in_specs=[
                pl.BlockSpec((1, C, L), lambda b: (b, 0, 0)),        # x
                pl.BlockSpec((1, 6 * C, 1), lambda b: (b, 0, 0)),    # adaLN output
                weight_spec((C, L, L)),                              # Toeplitz (bf16)
                weight_spec((2 * C, C)),                             # w1^T (bf16)
                weight_spec((2 * C, 1)),                             # b1
                weight_spec((C, 2 * C)),                             # w2^T (bf16)
                weight_spec((C, 1)),                                 # b2
            ],
            out_specs=pl.BlockSpec((1, C, L), lambda b: (b, 0, 0)),
            compiler_params=pltpu.CompilerParams(
                dimension_semantics=("parallel",),
                vmem_limit_bytes=vmem_limit),
        )(x, ada, t_mat, w1t, b1c, w2t, b2c)

    try:
        return run(single_buffer_weights=True)
    except Exception:
        # Graceful fallback if this jax build's TPU pipeline rejects
        # pl.Buffered(1) on invariant inputs: default double-buffering.
        return run(single_buffer_weights=False)


def reference(x, t_cond, w_ada, b_ada, T, w1, b1, w2, b2):
    # Pure-JAX reference of the PyTorch module (f32, exact-erf GELU).
    g = lambda v: jax.nn.gelu(v, approximate=False)

    def inorm(v):
        mu = jnp.mean(v, axis=-1, keepdims=True)
        var = jnp.mean((v - mu) ** 2, axis=-1, keepdims=True)
        return (v - mu) * jax.lax.rsqrt(var + EPS)

    ada = g(t_cond) @ w_ada + b_ada
    s_tm, sc_tm, g_tm, s_cm, sc_cm, g_cm = jnp.split(ada, 6, axis=1)

    y = inorm(x)
    y = y * (1.0 + sc_tm[..., None]) + s_tm[..., None]
    y_tm = jnp.einsum('cln,bcn->bcl', T, y)
    y1 = x + g_tm[..., None] * g(y_tm)

    y = inorm(y1)
    y = y * (1.0 + sc_cm[..., None]) + s_cm[..., None]
    z = jnp.swapaxes(y, 1, 2)
    h = g(z @ w1 + b1)
    z = h @ w2 + b2
    cm = jnp.swapaxes(z, 1, 2)
    return y1 + g_cm[..., None] * cm


if __name__ == "__main__":
    # TPU-friendly toy shapes: L a multiple of 128 (unmasked lane-dense stores),
    # C a multiple of 8 (full sublanes) -- no padding logic needed.
    B, C, L = 2, 8, 128
    C4 = C // 4

    key = jax.random.PRNGKey(0)
    ks = jax.random.split(key, 10)

    x = jax.random.normal(ks[0], (B, C, L), jnp.float32)
    t_cond = jax.random.normal(ks[1], (B, C4), jnp.float32)

    # NOTE: the PyTorch module zero-inits ada_ln's Linear (making the block an
    # identity at init); use small deterministic nonzero values so the whole
    # compute path is exercised. Forward-pass semantics are unchanged.
    w_ada = 0.1 * jax.random.normal(ks[2], (C4, 6 * C), jnp.float32)
    b_ada = 0.1 * jax.random.normal(ks[3], (1, 6 * C), jnp.float32)

    # FFTConv(C, bidirectional=True, activation=None) materialized as a per-channel
    # Toeplitz matrix (k0 causal, k1 anti-causal, D skip):
    #   y[l] = sum_{n<=l} k0[l-n] x[n] + sum_{n>l} k1[n-l-1] x[n] + D * x[l]
    k0 = (1.0 / L) * jax.random.normal(ks[4], (C, L), jnp.float32)
    k1 = (1.0 / L) * jax.random.normal(ks[5], (C, L), jnp.float32)
    D = jax.random.normal(ks[6], (C,), jnp.float32)
    l_idx = jnp.arange(L)[:, None]
    n_idx = jnp.arange(L)[None, :]
    diff = l_idx - n_idx
    causal = diff >= 0
    T = jnp.where(causal[None, :, :],
                  k0[:, jnp.where(causal, diff, 0)],
                  k1[:, jnp.where(~causal, -diff - 1, 0)])
    T = T + D[:, None, None] * jnp.eye(L, dtype=jnp.float32)[None]

    # channel_mixer: Linear(C -> 2C), GELU, Linear(2C -> C)
    w1 = (1.0 / np.sqrt(C)) * jax.random.normal(ks[7], (C, 2 * C), jnp.float32)
    b1 = 0.1 * jax.random.normal(ks[8], (1, 2 * C), jnp.float32)
    w2 = (1.0 / np.sqrt(2 * C)) * jax.random.normal(ks[9], (2 * C, C), jnp.float32)
    b2 = jnp.zeros((1, C), jnp.float32)

    out = jax.block_until_ready(
        denoiser_block(x, t_cond, w_ada, b_ada, T, w1, b1, w2, b2))
    ref = jax.block_until_ready(
        reference(x, t_cond, w_ada, b_ada, T, w1, b1, w2, b2))

    # bf16 MXU operands (f32 accumulation) + tanh GELU in the kernel vs. the
    # f32 / exact-erf reference: tolerance chosen accordingly.
    np.testing.assert_allclose(np.asarray(out), np.asarray(ref),
                               rtol=2e-2, atol=2e-2)

    print("KERNEL_OK")
</pallas_src>

<mosaic_0001>
module attributes {stable_mosaic.version = 11 : i64} {
  func.func @denoiser_block_kernel(%arg0: i32, %arg1: memref<1x8x128xf32, #tpu.memory_space<vmem>>, %arg2: memref<1x48x1xf32, #tpu.memory_space<vmem>>, %arg3: memref<8x128x128xbf16, #tpu.memory_space<vmem>>, %arg4: memref<16x8xbf16, #tpu.memory_space<vmem>>, %arg5: memref<16x1xf32, #tpu.memory_space<vmem>>, %arg6: memref<8x16xbf16, #tpu.memory_space<vmem>>, %arg7: memref<8x1xf32, #tpu.memory_space<vmem>>, %arg8: memref<1x8x128xf32, #tpu.memory_space<vmem>>) attributes {dimension_semantics = [#tpu.dimension_semantics<parallel>], iteration_bounds = array<i64: 2>, scalar_prefetch = 0 : i64, scratch_operands = 0 : i64, tpu.core_type = #tpu.core_type<tc>, window_params = [{transform_indices = @transform_0, window_bounds = array<i64: 1, 8, 128>}, {transform_indices = @transform_1, window_bounds = array<i64: 1, 48, 1>}, {pipeline_mode = #tpu.pipeline_mode<synchronous>, transform_indices = @transform_2, window_bounds = array<i64: 8, 128, 128>}, {pipeline_mode = #tpu.pipeline_mode<synchronous>, transform_indices = @transform_3, window_bounds = array<i64: 16, 8>}, {pipeline_mode = #tpu.pipeline_mode<synchronous>, transform_indices = @transform_4, window_bounds = array<i64: 16, 1>}, {pipeline_mode = #tpu.pipeline_mode<synchronous>, transform_indices = @transform_5, window_bounds = array<i64: 8, 16>}, {pipeline_mode = #tpu.pipeline_mode<synchronous>, transform_indices = @transform_6, window_bounds = array<i64: 8, 1>}, {transform_indices = @transform_7, window_bounds = array<i64: 1, 8, 128>}]} {
    %c0 = arith.constant 0 : index
    %c0_0 = arith.constant 0 : index
    %c0_1 = arith.constant 0 : index
    %0 = vector.load %arg1[%c0, %c0_0, %c0_1] : memref<1x8x128xf32, #tpu.memory_space<vmem>>, vector<1x8x128xf32>
    %1 = vector.shape_cast %0 : vector<1x8x128xf32> to vector<8x128xf32>
    %c0_2 = arith.constant 0 : index
    %c0_3 = arith.constant 0 : index
    %c0_4 = arith.constant 0 : index
    %2 = vector.load %arg2[%c0_2, %c0_3, %c0_4] : memref<1x48x1xf32, #tpu.memory_space<vmem>>, vector<1x48x1xf32>
    %3 = vector.shape_cast %2 : vector<1x48x1xf32> to vector<48x1xf32>
    %4 = vector.extract_strided_slice %3 {offsets = [0, 0], sizes = [8, 1], strides = [1, 1]} : vector<48x1xf32> to vector<8x1xf32>
    %5 = vector.extract_strided_slice %3 {offsets = [8, 0], sizes = [8, 1], strides = [1, 1]} : vector<48x1xf32> to vector<8x1xf32>
    %6 = vector.extract_strided_slice %3 {offsets = [16, 0], sizes = [8, 1], strides = [1, 1]} : vector<48x1xf32> to vector<8x1xf32>
    %7 = vector.extract_strided_slice %3 {offsets = [24, 0], sizes = [8, 1], strides = [1, 1]} : vector<48x1xf32> to vector<8x1xf32>
    %8 = vector.extract_strided_slice %3 {offsets = [32, 0], sizes = [8, 1], strides = [1, 1]} : vector<48x1xf32> to vector<8x1xf32>
    %9 = vector.extract_strided_slice %3 {offsets = [40, 0], sizes = [8, 1], strides = [1, 1]} : vector<48x1xf32> to vector<8x1xf32>
    %cst = arith.constant dense<0.000000e+00> : vector<8xf32>
    %10 = vector.multi_reduction <add>, %1, %cst [1] : vector<8x128xf32> to vector<8xf32>
    %11 = vector.shape_cast %10 : vector<8xf32> to vector<8x1xf32>
    %12 = arith.mulf %1, %1 : vector<8x128xf32>
    %cst_5 = arith.constant dense<0.000000e+00> : vector<8xf32>
    %13 = vector.multi_reduction <add>, %12, %cst_5 [1] : vector<8x128xf32> to vector<8xf32>
    %14 = vector.shape_cast %13 : vector<8xf32> to vector<8x1xf32>
    %cst_6 = arith.constant 7.812500e-03 : f32
    %15 = vector.broadcast %cst_6 : f32 to vector<8x1xf32>
    %16 = arith.mulf %11, %15 : vector<8x1xf32>
    %cst_7 = arith.constant 7.812500e-03 : f32
    %17 = vector.broadcast %cst_7 : f32 to vector<8x1xf32>
    %18 = arith.mulf %14, %17 : vector<8x1xf32>
    %19 = arith.mulf %16, %16 : vector<8x1xf32>
    %20 = arith.subf %18, %19 : vector<8x1xf32>
    %21 = vector.broadcast %16 : vector<8x1xf32> to vector<8x128xf32>
    %22 = arith.subf %1, %21 : vector<8x128xf32>
    %cst_8 = arith.constant 9.99999974E-6 : f32
    %23 = vector.broadcast %cst_8 : f32 to vector<8x1xf32>
    %24 = arith.addf %20, %23 : vector<8x1xf32>
    %25 = math.rsqrt %24 : vector<8x1xf32>
    %26 = vector.broadcast %25 : vector<8x1xf32> to vector<8x128xf32>
    %27 = arith.mulf %22, %26 : vector<8x128xf32>
    %cst_9 = arith.constant 1.000000e+00 : f32
    %28 = vector.broadcast %cst_9 : f32 to vector<8x1xf32>
    %29 = arith.addf %28, %5 : vector<8x1xf32>
    %30 = vector.broadcast %29 : vector<8x1xf32> to vector<8x128xf32>
    %31 = arith.mulf %27, %30 : vector<8x128xf32>
    %32 = vector.broadcast %4 : vector<8x1xf32> to vector<8x128xf32>
    %33 = arith.addf %31, %32 : vector<8x128xf32>
    %34 = arith.truncf %33 : vector<8x128xf32> to vector<8x128xbf16>
    %35 = vector.extract_strided_slice %34 {offsets = [0, 0], sizes = [1, 128], strides = [1, 1]} : vector<8x128xbf16> to vector<1x128xbf16>
    %c0_10 = arith.constant 0 : index
    %c0_11 = arith.constant 0 : index
    %c0_12 = arith.constant 0 : index
    %36 = vector.load %arg3[%c0_10, %c0_11, %c0_12] : memref<8x128x128xbf16, #tpu.memory_space<vmem>>, vector<1x128x128xbf16>
    %37 = vector.shape_cast %36 : vector<1x128x128xbf16> to vector<128x128xbf16>
    %cst_13 = arith.constant dense<0.000000e+00> : vector<1x128xf32>
    %38 = tpu.matmul %35, %37, %cst_13 {dimension_numbers = #tpu.dot_dimension_numbers<[1], [1], [0], [0], [0, 0, 1, 0], [], []>} : vector<1x128xbf16>, vector<128x128xbf16>, vector<1x128xf32> -> vector<1x128xf32>
    %39 = vector.extract_strided_slice %34 {offsets = [1, 0], sizes = [1, 128], strides = [1, 1]} : vector<8x128xbf16> to vector<1x128xbf16>
    %c1 = arith.constant 1 : index
    %c0_14 = arith.constant 0 : index
    %c0_15 = arith.constant 0 : index
    %40 = vector.load %arg3[%c1, %c0_14, %c0_15] : memref<8x128x128xbf16, #tpu.memory_space<vmem>>, vector<1x128x128xbf16>
    %41 = vector.shape_cast %40 : vector<1x128x128xbf16> to vector<128x128xbf16>
    %cst_16 = arith.constant dense<0.000000e+00> : vector<1x128xf32>
    %42 = tpu.matmul %39, %41, %cst_16 {dimension_numbers = #tpu.dot_dimension_numbers<[1], [1], [0], [0], [0, 0, 1, 0], [], []>} : vector<1x128xbf16>, vector<128x128xbf16>, vector<1x128xf32> -> vector<1x128xf32>
    %43 = vector.extract_strided_slice %34 {offsets = [2, 0], sizes = [1, 128], strides = [1, 1]} : vector<8x128xbf16> to vector<1x128xbf16>
    %c2 = arith.constant 2 : index
    %c0_17 = arith.constant 0 : index
    %c0_18 = arith.constant 0 : index
    %44 = vector.load %arg3[%c2, %c0_17, %c0_18] : memref<8x128x128xbf16, #tpu.memory_space<vmem>>, vector<1x128x128xbf16>
    %45 = vector.shape_cast %44 : vector<1x128x128xbf16> to vector<128x128xbf16>
    %cst_19 = arith.constant dense<0.000000e+00> : vector<1x128xf32>
    %46 = tpu.matmul %43, %45, %cst_19 {dimension_numbers = #tpu.dot_dimension_numbers<[1], [1], [0], [0], [0, 0, 1, 0], [], []>} : vector<1x128xbf16>, vector<128x128xbf16>, vector<1x128xf32> -> vector<1x128xf32>
    %47 = vector.extract_strided_slice %34 {offsets = [3, 0], sizes = [1, 128], strides = [1, 1]} : vector<8x128xbf16> to vector<1x128xbf16>
    %c3 = arith.constant 3 : index
    %c0_20 = arith.constant 0 : index
    %c0_21 = arith.constant 0 : index
    %48 = vector.load %arg3[%c3, %c0_20, %c0_21] : memref<8x128x128xbf16, #tpu.memory_space<vmem>>, vector<1x128x128xbf16>
    %49 = vector.shape_cast %48 : vector<1x128x128xbf16> to vector<128x128xbf16>
    %cst_22 = arith.constant dense<0.000000e+00> : vector<1x128xf32>
    %50 = tpu.matmul %47, %49, %cst_22 {dimension_numbers = #tpu.dot_dimension_numbers<[1], [1], [0], [0], [0, 0, 1, 0], [], []>} : vector<1x128xbf16>, vector<128x128xbf16>, vector<1x128xf32> -> vector<1x128xf32>
    %51 = vector.extract_strided_slice %34 {offsets = [4, 0], sizes = [1, 128], strides = [1, 1]} : vector<8x128xbf16> to vector<1x128xbf16>
    %c4 = arith.constant 4 : index
    %c0_23 = arith.constant 0 : index
    %c0_24 = arith.constant 0 : index
    %52 = vector.load %arg3[%c4, %c0_23, %c0_24] : memref<8x128x128xbf16, #tpu.memory_space<vmem>>, vector<1x128x128xbf16>
    %53 = vector.shape_cast %52 : vector<1x128x128xbf16> to vector<128x128xbf16>
    %cst_25 = arith.constant dense<0.000000e+00> : vector<1x128xf32>
    %54 = tpu.matmul %51, %53, %cst_25 {dimension_numbers = #tpu.dot_dimension_numbers<[1], [1], [0], [0], [0, 0, 1, 0], [], []>} : vector<1x128xbf16>, vector<128x128xbf16>, vector<1x128xf32> -> vector<1x128xf32>
    %55 = vector.extract_strided_slice %34 {offsets = [5, 0], sizes = [1, 128], strides = [1, 1]} : vector<8x128xbf16> to vector<1x128xbf16>
    %c5 = arith.constant 5 : index
    %c0_26 = arith.constant 0 : index
    %c0_27 = arith.constant 0 : index
    %56 = vector.load %arg3[%c5, %c0_26, %c0_27] : memref<8x128x128xbf16, #tpu.memory_space<vmem>>, vector<1x128x128xbf16>
    %57 = vector.shape_cast %56 : vector<1x128x128xbf16> to vector<128x128xbf16>
    %cst_28 = arith.constant dense<0.000000e+00> : vector<1x128xf32>
    %58 = tpu.matmul %55, %57, %cst_28 {dimension_numbers = #tpu.dot_dimension_numbers<[1], [1], [0], [0], [0, 0, 1, 0], [], []>} : vector<1x128xbf16>, vector<128x128xbf16>, vector<1x128xf32> -> vector<1x128xf32>
    %59 = vector.extract_strided_slice %34 {offsets = [6, 0], sizes = [1, 128], strides = [1, 1]} : vector<8x128xbf16> to vector<1x128xbf16>
    %c6 = arith.constant 6 : index
    %c0_29 = arith.constant 0 : index
    %c0_30 = arith.constant 0 : index
    %60 = vector.load %arg3[%c6, %c0_29, %c0_30] : memref<8x128x128xbf16, #tpu.memory_space<vmem>>, vector<1x128x128xbf16>
    %61 = vector.shape_cast %60 : vector<1x128x128xbf16> to vector<128x128xbf16>
    %cst_31 = arith.constant dense<0.000000e+00> : vector<1x128xf32>
    %62 = tpu.matmul %59, %61, %cst_31 {dimension_numbers = #tpu.dot_dimension_numbers<[1], [1], [0], [0], [0, 0, 1, 0], [], []>} : vector<1x128xbf16>, vector<128x128xbf16>, vector<1x128xf32> -> vector<1x128xf32>
    %63 = vector.extract_strided_slice %34 {offsets = [7, 0], sizes = [1, 128], strides = [1, 1]} : vector<8x128xbf16> to vector<1x128xbf16>
    %c7 = arith.constant 7 : index
    %c0_32 = arith.constant 0 : index
    %c0_33 = arith.constant 0 : index
    %64 = vector.load %arg3[%c7, %c0_32, %c0_33] : memref<8x128x128xbf16, #tpu.memory_space<vmem>>, vector<1x128x128xbf16>
    %65 = vector.shape_cast %64 : vector<1x128x128xbf16> to vector<128x128xbf16>
    %cst_34 = arith.constant dense<0.000000e+00> : vector<1x128xf32>
    %66 = tpu.matmul %63, %65, %cst_34 {dimension_numbers = #tpu.dot_dimension_numbers<[1], [1], [0], [0], [0, 0, 1, 0], [], []>} : vector<1x128xbf16>, vector<128x128xbf16>, vector<1x128xf32> -> vector<1x128xf32>
    %67 = tpu.concatenate %38, %42, %46, %50, %54, %58, %62, %66 in 0 : vector<1x128xf32>, vector<1x128xf32>, vector<1x128xf32>, vector<1x128xf32>, vector<1x128xf32>, vector<1x128xf32>, vector<1x128xf32>, vector<1x128xf32> -> vector<8x128xf32>
    %68 = arith.mulf %67, %67 : vector<8x128xf32>
    %69 = arith.mulf %67, %68 : vector<8x128xf32>
    %cst_35 = arith.constant 4.471500e-02 : f32
    %70 = vector.broadcast %cst_35 : f32 to vector<8x128xf32>
    %71 = arith.mulf %70, %69 : vector<8x128xf32>
    %72 = arith.addf %67, %71 : vector<8x128xf32>
    %cst_36 = arith.constant 0.797884583 : f32
    %73 = vector.broadcast %cst_36 : f32 to vector<8x128xf32>
    %74 = arith.mulf %73, %72 : vector<8x128xf32>
    %75 = math.tanh %74 : vector<8x128xf32>
    %cst_37 = arith.constant 1.000000e+00 : f32
    %76 = vector.broadcast %cst_37 : f32 to vector<8x128xf32>
    %77 = arith.addf %76, %75 : vector<8x128xf32>
    %cst_38 = arith.constant 5.000000e-01 : f32
    %78 = vector.broadcast %cst_38 : f32 to vector<8x128xf32>
    %79 = arith.mulf %78, %77 : vector<8x128xf32>
    %80 = arith.mulf %67, %79 : vector<8x128xf32>
    %81 = vector.broadcast %6 : vector<8x1xf32> to vector<8x128xf32>
    %82 = arith.mulf %81, %80 : vector<8x128xf32>
    %83 = arith.addf %1, %82 : vector<8x128xf32>
    %cst_39 = arith.constant dense<0.000000e+00> : vector<8xf32>
    %84 = vector.multi_reduction <add>, %83, %cst_39 [1] : vector<8x128xf32> to vector<8xf32>
    %85 = vector.shape_cast %84 : vector<8xf32> to vector<8x1xf32>
    %86 = arith.mulf %83, %83 : vector<8x128xf32>
    %cst_40 = arith.constant dense<0.000000e+00> : vector<8xf32>
    %87 = vector.multi_reduction <add>, %86, %cst_40 [1] : vector<8x128xf32> to vector<8xf32>
    %88 = vector.shape_cast %87 : vector<8xf32> to vector<8x1xf32>
    %cst_41 = arith.constant 7.812500e-03 : f32
    %89 = vector.broadcast %cst_41 : f32 to vector<8x1xf32>
    %90 = arith.mulf %85, %89 : vector<8x1xf32>
    %cst_42 = arith.constant 7.812500e-03 : f32
    %91 = vector.broadcast %cst_42 : f32 to vector<8x1xf32>
    %92 = arith.mulf %88, %91 : vector<8x1xf32>
    %93 = arith.mulf %90, %90 : vector<8x1xf32>
    %94 = arith.subf %92, %93 : vector<8x1xf32>
    %95 = vector.broadcast %90 : vector<8x1xf32> to vector<8x128xf32>
    %96 = arith.subf %83, %95 : vector<8x128xf32>
    %cst_43 = arith.constant 9.99999974E-6 : f32
    %97 = vector.broadcast %cst_43 : f32 to vector<8x1xf32>
    %98 = arith.addf %94, %97 : vector<8x1xf32>
    %99 = math.rsqrt %98 : vector<8x1xf32>
    %100 = vector.broadcast %99 : vector<8x1xf32> to vector<8x128xf32>
    %101 = arith.mulf %96, %100 : vector<8x128xf32>
    %cst_44 = arith.constant 1.000000e+00 : f32
    %102 = vector.broadcast %cst_44 : f32 to vector<8x1xf32>
    %103 = arith.addf %102, %8 : vector<8x1xf32>
    %104 = vector.broadcast %103 : vector<8x1xf32> to vector<8x128xf32>
    %105 = arith.mulf %101, %104 : vector<8x128xf32>
    %106 = vector.broadcast %7 : vector<8x1xf32> to vector<8x128xf32>
    %107 = arith.addf %105, %106 : vector<8x128xf32>
    %c0_45 = arith.constant 0 : index
    %c0_46 = arith.constant 0 : index
    %108 = vector.load %arg4[%c0_45, %c0_46] : memref<16x8xbf16, #tpu.memory_space<vmem>>, vector<16x8xbf16>
    %109 = arith.truncf %107 : vector<8x128xf32> to vector<8x128xbf16>
    %cst_47 = arith.constant dense<0.000000e+00> : vector<16x128xf32>
    %110 = tpu.matmul %108, %109, %cst_47 {dimension_numbers = #tpu.dot_dimension_numbers<[1], [0], [0], [1], [0, 0, 1, 1], [], []>} : vector<16x8xbf16>, vector<8x128xbf16>, vector<16x128xf32> -> vector<16x128xf32>
    %c0_48 = arith.constant 0 : index
    %c0_49 = arith.constant 0 : index
    %111 = vector.load %arg5[%c0_48, %c0_49] : memref<16x1xf32, #tpu.memory_space<vmem>>, vector<16x1xf32>
    %112 = vector.broadcast %111 : vector<16x1xf32> to vector<16x128xf32>
    %113 = arith.addf %110, %112 : vector<16x128xf32>
    %114 = arith.mulf %113, %113 : vector<16x128xf32>
    %115 = arith.mulf %113, %114 : vector<16x128xf32>
    %cst_50 = arith.constant 4.471500e-02 : f32
    %116 = vector.broadcast %cst_50 : f32 to vector<16x128xf32>
    %117 = arith.mulf %116, %115 : vector<16x128xf32>
    %118 = arith.addf %113, %117 : vector<16x128xf32>
    %cst_51 = arith.constant 0.797884583 : f32
    %119 = vector.broadcast %cst_51 : f32 to vector<16x128xf32>
    %120 = arith.mulf %119, %118 : vector<16x128xf32>
    %121 = math.tanh %120 : vector<16x128xf32>
    %cst_52 = arith.constant 1.000000e+00 : f32
    %122 = vector.broadcast %cst_52 : f32 to vector<16x128xf32>
    %123 = arith.addf %122, %121 : vector<16x128xf32>
    %cst_53 = arith.constant 5.000000e-01 : f32
    %124 = vector.broadcast %cst_53 : f32 to vector<16x128xf32>
    %125 = arith.mulf %124, %123 : vector<16x128xf32>
    %126 = arith.mulf %113, %125 : vector<16x128xf32>
    %c0_54 = arith.constant 0 : index
    %c0_55 = arith.constant 0 : index
    %127 = vector.load %arg6[%c0_54, %c0_55] : memref<8x16xbf16, #tpu.memory_space<vmem>>, vector<8x16xbf16>
    %128 = arith.truncf %126 : vector<16x128xf32> to vector<16x128xbf16>
    %cst_56 = arith.constant dense<0.000000e+00> : vector<8x128xf32>
    %129 = tpu.matmul %127, %128, %cst_56 {dimension_numbers = #tpu.dot_dimension_numbers<[1], [0], [0], [1], [0, 0, 1, 1], [], []>} : vector<8x16xbf16>, vector<16x128xbf16>, vector<8x128xf32> -> vector<8x128xf32>
    %c0_57 = arith.constant 0 : index
    %c0_58 = arith.constant 0 : index
    %130 = vector.load %arg7[%c0_57, %c0_58] : memref<8x1xf32, #tpu.memory_space<vmem>>, vector<8x1xf32>
    %131 = vector.broadcast %130 : vector<8x1xf32> to vector<8x128xf32>
    %132 = arith.addf %129, %131 : vector<8x128xf32>
    %133 = vector.broadcast %9 : vector<8x1xf32> to vector<8x128xf32>
    %134 = arith.mulf %133, %132 : vector<8x128xf32>
    %135 = arith.addf %83, %134 : vector<8x128xf32>
    %c0_59 = arith.constant 0 : index
    %c0_60 = arith.constant 0 : index
    %c0_61 = arith.constant 0 : index
    %136 = vector.load %arg8[%c0_59, %c0_60, %c0_61] : memref<1x8x128xf32, #tpu.memory_space<vmem>>, vector<1x8x128xf32>
    %137 = vector.shape_cast %136 : vector<1x8x128xf32> to vector<8x128xf32>
    %138 = vector.shape_cast %135 : vector<8x128xf32> to vector<1x8x128xf32>
    tpu.vector_store %arg8[%c0_59, %c0_60, %c0_61], %138 {strides = array<i32>} : memref<1x8x128xf32, #tpu.memory_space<vmem>>, vector<1x8x128xf32>,
    return
  }
  func.func @transform_0(%arg0: i32) -> (i32, i32, i32) {
    %c0_i32 = arith.constant 0 : i32
    %c0_i32_0 = arith.constant 0 : i32
    %c0_i32_1 = arith.constant 0 : i32
    return %arg0, %c0_i32, %c0_i32_0 : i32, i32, i32
  }
  func.func @transform_1(%arg0: i32) -> (i32, i32, i32) {
    %c0_i32 = arith.constant 0 : i32
    %c0_i32_0 = arith.constant 0 : i32
    %c0_i32_1 = arith.constant 0 : i32
    return %arg0, %c0_i32, %c0_i32_0 : i32, i32, i32
  }
  func.func @transform_2(%arg0: i32) -> (i32, i32, i32) {
    %c0_i32 = arith.constant 0 : i32
    %c0_i32_0 = arith.constant 0 : i32
    %c0_i32_1 = arith.constant 0 : i32
    %c0_i32_2 = arith.constant 0 : i32
    return %c0_i32, %c0_i32_0, %c0_i32_1 : i32, i32, i32
  }
  func.func @transform_3(%arg0: i32) -> (i32, i32) {
    %c0_i32 = arith.constant 0 : i32
    %c0_i32_0 = arith.constant 0 : i32
    %c0_i32_1 = arith.constant 0 : i32
    return %c0_i32, %c0_i32_0 : i32, i32
  }
  func.func @transform_4(%arg0: i32) -> (i32, i32) {
    %c0_i32 = arith.constant 0 : i32
    %c0_i32_0 = arith.constant 0 : i32
    %c0_i32_1 = arith.constant 0 : i32
    return %c0_i32, %c0_i32_0 : i32, i32
  }
  func.func @transform_5(%arg0: i32) -> (i32, i32) {
    %c0_i32 = arith.constant 0 : i32
    %c0_i32_0 = arith.constant 0 : i32
    %c0_i32_1 = arith.constant 0 : i32
    return %c0_i32, %c0_i32_0 : i32, i32
  }
  func.func @transform_6(%arg0: i32) -> (i32, i32) {
    %c0_i32 = arith.constant 0 : i32
    %c0_i32_0 = arith.constant 0 : i32
    %c0_i32_1 = arith.constant 0 : i32
    return %c0_i32, %c0_i32_0 : i32, i32
  }
  func.func @transform_7(%arg0: i32) -> (i32, i32, i32) {
    %c0_i32 = arith.constant 0 : i32
    %c0_i32_0 = arith.constant 0 : i32
    %c0_i32_1 = arith.constant 0 : i32
    return %arg0, %c0_i32, %c0_i32_0 : i32, i32, i32
  }
}

module attributes {stable_mosaic.version = 11 : i64} {
  func.func @denoiser_block_kernel(%arg0: i32, %arg1: memref<1x8x128xf32, #tpu.memory_space<vmem>>, %arg2: memref<1x48x1xf32, #tpu.memory_space<vmem>>, %arg3: memref<8x128x128xbf16, #tpu.memory_space<vmem>>, %arg4: memref<16x8xbf16, #tpu.memory_space<vmem>>, %arg5: memref<16x1xf32, #tpu.memory_space<vmem>>, %arg6: memref<8x16xbf16, #tpu.memory_space<vmem>>, %arg7: memref<8x1xf32, #tpu.memory_space<vmem>>, %arg8: memref<1x8x128xf32, #tpu.memory_space<vmem>>) attributes {dimension_semantics = [#tpu.dimension_semantics<parallel>], iteration_bounds = array<i64: 2>, scalar_prefetch = 0 : i64, scratch_operands = 0 : i64, tpu.core_type = #tpu.core_type<tc>, window_params = [{transform_indices = @transform_0, window_bounds = array<i64: 1, 8, 128>}, {transform_indices = @transform_1, window_bounds = array<i64: 1, 48, 1>}, {pipeline_mode = #tpu.pipeline_mode<synchronous>, transform_indices = @transform_2, window_bounds = array<i64: 8, 128, 128>}, {pipeline_mode = #tpu.pipeline_mode<synchronous>, transform_indices = @transform_3, window_bounds = array<i64: 16, 8>}, {pipeline_mode = #tpu.pipeline_mode<synchronous>, transform_indices = @transform_4, window_bounds = array<i64: 16, 1>}, {pipeline_mode = #tpu.pipeline_mode<synchronous>, transform_indices = @transform_5, window_bounds = array<i64: 8, 16>}, {pipeline_mode = #tpu.pipeline_mode<synchronous>, transform_indices = @transform_6, window_bounds = array<i64: 8, 1>}, {transform_indices = @transform_7, window_bounds = array<i64: 1, 8, 128>}]} {
    %c0 = arith.constant 0 : index
    %c0_0 = arith.constant 0 : index
    %c0_1 = arith.constant 0 : index
    %0 = vector.load %arg1[%c0, %c0_0, %c0_1] : memref<1x8x128xf32, #tpu.memory_space<vmem>>, vector<1x8x128xf32>
    %1 = vector.shape_cast %0 : vector<1x8x128xf32> to vector<8x128xf32>
    %c0_2 = arith.constant 0 : index
    %c0_3 = arith.constant 0 : index
    %c0_4 = arith.constant 0 : index
    %2 = vector.load %arg2[%c0_2, %c0_3, %c0_4] : memref<1x48x1xf32, #tpu.memory_space<vmem>>, vector<1x48x1xf32>
    %3 = vector.shape_cast %2 : vector<1x48x1xf32> to vector<48x1xf32>
    %4 = vector.extract_strided_slice %3 {offsets = [0, 0], sizes = [8, 1], strides = [1, 1]} : vector<48x1xf32> to vector<8x1xf32>
    %5 = vector.extract_strided_slice %3 {offsets = [8, 0], sizes = [8, 1], strides = [1, 1]} : vector<48x1xf32> to vector<8x1xf32>
    %6 = vector.extract_strided_slice %3 {offsets = [16, 0], sizes = [8, 1], strides = [1, 1]} : vector<48x1xf32> to vector<8x1xf32>
    %7 = vector.extract_strided_slice %3 {offsets = [24, 0], sizes = [8, 1], strides = [1, 1]} : vector<48x1xf32> to vector<8x1xf32>
    %8 = vector.extract_strided_slice %3 {offsets = [32, 0], sizes = [8, 1], strides = [1, 1]} : vector<48x1xf32> to vector<8x1xf32>
    %9 = vector.extract_strided_slice %3 {offsets = [40, 0], sizes = [8, 1], strides = [1, 1]} : vector<48x1xf32> to vector<8x1xf32>
    %cst = arith.constant dense<0.000000e+00> : vector<8xf32>
    %10 = vector.multi_reduction <add>, %1, %cst [1] : vector<8x128xf32> to vector<8xf32>
    %11 = vector.shape_cast %10 : vector<8xf32> to vector<8x1xf32>
    %12 = arith.mulf %1, %1 : vector<8x128xf32>
    %cst_5 = arith.constant dense<0.000000e+00> : vector<8xf32>
    %13 = vector.multi_reduction <add>, %12, %cst_5 [1] : vector<8x128xf32> to vector<8xf32>
    %14 = vector.shape_cast %13 : vector<8xf32> to vector<8x1xf32>
    %cst_6 = arith.constant 7.812500e-03 : f32
    %15 = vector.broadcast %cst_6 : f32 to vector<8x1xf32>
    %16 = arith.mulf %11, %15 : vector<8x1xf32>
    %cst_7 = arith.constant 7.812500e-03 : f32
    %17 = vector.broadcast %cst_7 : f32 to vector<8x1xf32>
    %18 = arith.mulf %14, %17 : vector<8x1xf32>
    %19 = arith.mulf %16, %16 : vector<8x1xf32>
    %20 = arith.subf %18, %19 : vector<8x1xf32>
    %21 = vector.broadcast %16 : vector<8x1xf32> to vector<8x128xf32>
    %22 = arith.subf %1, %21 : vector<8x128xf32>
    %cst_8 = arith.constant 9.99999974E-6 : f32
    %23 = vector.broadcast %cst_8 : f32 to vector<8x1xf32>
    %24 = arith.addf %20, %23 : vector<8x1xf32>
    %25 = math.rsqrt %24 : vector<8x1xf32>
    %26 = vector.broadcast %25 : vector<8x1xf32> to vector<8x128xf32>
    %27 = arith.mulf %22, %26 : vector<8x128xf32>
    %cst_9 = arith.constant 1.000000e+00 : f32
    %28 = vector.broadcast %cst_9 : f32 to vector<8x1xf32>
    %29 = arith.addf %28, %5 : vector<8x1xf32>
    %30 = vector.broadcast %29 : vector<8x1xf32> to vector<8x128xf32>
    %31 = arith.mulf %27, %30 : vector<8x128xf32>
    %32 = vector.broadcast %4 : vector<8x1xf32> to vector<8x128xf32>
    %33 = arith.addf %31, %32 : vector<8x128xf32>
    %34 = arith.truncf %33 : vector<8x128xf32> to vector<8x128xbf16>
    %35 = vector.extract_strided_slice %34 {offsets = [0, 0], sizes = [1, 128], strides = [1, 1]} : vector<8x128xbf16> to vector<1x128xbf16>
    %c0_10 = arith.constant 0 : index
    %c0_11 = arith.constant 0 : index
    %c0_12 = arith.constant 0 : index
    %36 = vector.load %arg3[%c0_10, %c0_11, %c0_12] : memref<8x128x128xbf16, #tpu.memory_space<vmem>>, vector<1x128x128xbf16>
    %37 = vector.shape_cast %36 : vector<1x128x128xbf16> to vector<128x128xbf16>
    %cst_13 = arith.constant dense<0.000000e+00> : vector<1x128xf32>
    %38 = tpu.matmul %35, %37, %cst_13 {dimension_numbers = #tpu.dot_dimension_numbers<[1], [1], [0], [0], [0, 0, 1, 0], [], []>} : vector<1x128xbf16>, vector<128x128xbf16>, vector<1x128xf32> -> vector<1x128xf32>
    %39 = vector.extract_strided_slice %34 {offsets = [1, 0], sizes = [1, 128], strides = [1, 1]} : vector<8x128xbf16> to vector<1x128xbf16>
    %c1 = arith.constant 1 : index
    %c0_14 = arith.constant 0 : index
    %c0_15 = arith.constant 0 : index
    %40 = vector.load %arg3[%c1, %c0_14, %c0_15] : memref<8x128x128xbf16, #tpu.memory_space<vmem>>, vector<1x128x128xbf16>
    %41 = vector.shape_cast %40 : vector<1x128x128xbf16> to vector<128x128xbf16>
    %cst_16 = arith.constant dense<0.000000e+00> : vector<1x128xf32>
    %42 = tpu.matmul %39, %41, %cst_16 {dimension_numbers = #tpu.dot_dimension_numbers<[1], [1], [0], [0], [0, 0, 1, 0], [], []>} : vector<1x128xbf16>, vector<128x128xbf16>, vector<1x128xf32> -> vector<1x128xf32>
    %43 = vector.extract_strided_slice %34 {offsets = [2, 0], sizes = [1, 128], strides = [1, 1]} : vector<8x128xbf16> to vector<1x128xbf16>
    %c2 = arith.constant 2 : index
    %c0_17 = arith.constant 0 : index
    %c0_18 = arith.constant 0 : index
    %44 = vector.load %arg3[%c2, %c0_17, %c0_18] : memref<8x128x128xbf16, #tpu.memory_space<vmem>>, vector<1x128x128xbf16>
    %45 = vector.shape_cast %44 : vector<1x128x128xbf16> to vector<128x128xbf16>
    %cst_19 = arith.constant dense<0.000000e+00> : vector<1x128xf32>
    %46 = tpu.matmul %43, %45, %cst_19 {dimension_numbers = #tpu.dot_dimension_numbers<[1], [1], [0], [0], [0, 0, 1, 0], [], []>} : vector<1x128xbf16>, vector<128x128xbf16>, vector<1x128xf32> -> vector<1x128xf32>
    %47 = vector.extract_strided_slice %34 {offsets = [3, 0], sizes = [1, 128], strides = [1, 1]} : vector<8x128xbf16> to vector<1x128xbf16>
    %c3 = arith.constant 3 : index
    %c0_20 = arith.constant 0 : index
    %c0_21 = arith.constant 0 : index
    %48 = vector.load %arg3[%c3, %c0_20, %c0_21] : memref<8x128x128xbf16, #tpu.memory_space<vmem>>, vector<1x128x128xbf16>
    %49 = vector.shape_cast %48 : vector<1x128x128xbf16> to vector<128x128xbf16>
    %cst_22 = arith.constant dense<0.000000e+00> : vector<1x128xf32>
    %50 = tpu.matmul %47, %49, %cst_22 {dimension_numbers = #tpu.dot_dimension_numbers<[1], [1], [0], [0], [0, 0, 1, 0], [], []>} : vector<1x128xbf16>, vector<128x128xbf16>, vector<1x128xf32> -> vector<1x128xf32>
    %51 = vector.extract_strided_slice %34 {offsets = [4, 0], sizes = [1, 128], strides = [1, 1]} : vector<8x128xbf16> to vector<1x128xbf16>
    %c4 = arith.constant 4 : index
    %c0_23 = arith.constant 0 : index
    %c0_24 = arith.constant 0 : index
    %52 = vector.load %arg3[%c4, %c0_23, %c0_24] : memref<8x128x128xbf16, #tpu.memory_space<vmem>>, vector<1x128x128xbf16>
    %53 = vector.shape_cast %52 : vector<1x128x128xbf16> to vector<128x128xbf16>
    %cst_25 = arith.constant dense<0.000000e+00> : vector<1x128xf32>
    %54 = tpu.matmul %51, %53, %cst_25 {dimension_numbers = #tpu.dot_dimension_numbers<[1], [1], [0], [0], [0, 0, 1, 0], [], []>} : vector<1x128xbf16>, vector<128x128xbf16>, vector<1x128xf32> -> vector<1x128xf32>
    %55 = vector.extract_strided_slice %34 {offsets = [5, 0], sizes = [1, 128], strides = [1, 1]} : vector<8x128xbf16> to vector<1x128xbf16>
    %c5 = arith.constant 5 : index
    %c0_26 = arith.constant 0 : index
    %c0_27 = arith.constant 0 : index
    %56 = vector.load %arg3[%c5, %c0_26, %c0_27] : memref<8x128x128xbf16, #tpu.memory_space<vmem>>, vector<1x128x128xbf16>
    %57 = vector.shape_cast %56 : vector<1x128x128xbf16> to vector<128x128xbf16>
    %cst_28 = arith.constant dense<0.000000e+00> : vector<1x128xf32>
    %58 = tpu.matmul %55, %57, %cst_28 {dimension_numbers = #tpu.dot_dimension_numbers<[1], [1], [0], [0], [0, 0, 1, 0], [], []>} : vector<1x128xbf16>, vector<128x128xbf16>, vector<1x128xf32> -> vector<1x128xf32>
    %59 = vector.extract_strided_slice %34 {offsets = [6, 0], sizes = [1, 128], strides = [1, 1]} : vector<8x128xbf16> to vector<1x128xbf16>
    %c6 = arith.constant 6 : index
    %c0_29 = arith.constant 0 : index
    %c0_30 = arith.constant 0 : index
    %60 = vector.load %arg3[%c6, %c0_29, %c0_30] : memref<8x128x128xbf16, #tpu.memory_space<vmem>>, vector<1x128x128xbf16>
    %61 = vector.shape_cast %60 : vector<1x128x128xbf16> to vector<128x128xbf16>
    %cst_31 = arith.constant dense<0.000000e+00> : vector<1x128xf32>
    %62 = tpu.matmul %59, %61, %cst_31 {dimension_numbers = #tpu.dot_dimension_numbers<[1], [1], [0], [0], [0, 0, 1, 0], [], []>} : vector<1x128xbf16>, vector<128x128xbf16>, vector<1x128xf32> -> vector<1x128xf32>
    %63 = vector.extract_strided_slice %34 {offsets = [7, 0], sizes = [1, 128], strides = [1, 1]} : vector<8x128xbf16> to vector<1x128xbf16>
    %c7 = arith.constant 7 : index
    %c0_32 = arith.constant 0 : index
    %c0_33 = arith.constant 0 : index
    %64 = vector.load %arg3[%c7, %c0_32, %c0_33] : memref<8x128x128xbf16, #tpu.memory_space<vmem>>, vector<1x128x128xbf16>
    %65 = vector.shape_cast %64 : vector<1x128x128xbf16> to vector<128x128xbf16>
    %cst_34 = arith.constant dense<0.000000e+00> : vector<1x128xf32>
    %66 = tpu.matmul %63, %65, %cst_34 {dimension_numbers = #tpu.dot_dimension_numbers<[1], [1], [0], [0], [0, 0, 1, 0], [], []>} : vector<1x128xbf16>, vector<128x128xbf16>, vector<1x128xf32> -> vector<1x128xf32>
    %67 = tpu.concatenate %38, %42, %46, %50, %54, %58, %62, %66 in 0 : vector<1x128xf32>, vector<1x128xf32>, vector<1x128xf32>, vector<1x128xf32>, vector<1x128xf32>, vector<1x128xf32>, vector<1x128xf32>, vector<1x128xf32> -> vector<8x128xf32>
    %68 = arith.mulf %67, %67 : vector<8x128xf32>
    %69 = arith.mulf %67, %68 : vector<8x128xf32>
    %cst_35 = arith.constant 4.471500e-02 : f32
    %70 = vector.broadcast %cst_35 : f32 to vector<8x128xf32>
    %71 = arith.mulf %70, %69 : vector<8x128xf32>
    %72 = arith.addf %67, %71 : vector<8x128xf32>
    %cst_36 = arith.constant 0.797884583 : f32
    %73 = vector.broadcast %cst_36 : f32 to vector<8x128xf32>
    %74 = arith.mulf %73, %72 : vector<8x128xf32>
    %75 = math.tanh %74 : vector<8x128xf32>
    %cst_37 = arith.constant 1.000000e+00 : f32
    %76 = vector.broadcast %cst_37 : f32 to vector<8x128xf32>
    %77 = arith.addf %76, %75 : vector<8x128xf32>
    %cst_38 = arith.constant 5.000000e-01 : f32
    %78 = vector.broadcast %cst_38 : f32 to vector<8x128xf32>
    %79 = arith.mulf %78, %77 : vector<8x128xf32>
    %80 = arith.mulf %67, %79 : vector<8x128xf32>
    %81 = vector.broadcast %6 : vector<8x1xf32> to vector<8x128xf32>
    %82 = arith.mulf %81, %80 : vector<8x128xf32>
    %83 = arith.addf %1, %82 : vector<8x128xf32>
    %cst_39 = arith.constant dense<0.000000e+00> : vector<8xf32>
    %84 = vector.multi_reduction <add>, %83, %cst_39 [1] : vector<8x128xf32> to vector<8xf32>
    %85 = vector.shape_cast %84 : vector<8xf32> to vector<8x1xf32>
    %86 = arith.mulf %83, %83 : vector<8x128xf32>
    %cst_40 = arith.constant dense<0.000000e+00> : vector<8xf32>
    %87 = vector.multi_reduction <add>, %86, %cst_40 [1] : vector<8x128xf32> to vector<8xf32>
    %88 = vector.shape_cast %87 : vector<8xf32> to vector<8x1xf32>
    %cst_41 = arith.constant 7.812500e-03 : f32
    %89 = vector.broadcast %cst_41 : f32 to vector<8x1xf32>
    %90 = arith.mulf %85, %89 : vector<8x1xf32>
    %cst_42 = arith.constant 7.812500e-03 : f32
    %91 = vector.broadcast %cst_42 : f32 to vector<8x1xf32>
    %92 = arith.mulf %88, %91 : vector<8x1xf32>
    %93 = arith.mulf %90, %90 : vector<8x1xf32>
    %94 = arith.subf %92, %93 : vector<8x1xf32>
    %95 = vector.broadcast %90 : vector<8x1xf32> to vector<8x128xf32>
    %96 = arith.subf %83, %95 : vector<8x128xf32>
    %cst_43 = arith.constant 9.99999974E-6 : f32
    %97 = vector.broadcast %cst_43 : f32 to vector<8x1xf32>
    %98 = arith.addf %94, %97 : vector<8x1xf32>
    %99 = math.rsqrt %98 : vector<8x1xf32>
    %100 = vector.broadcast %99 : vector<8x1xf32> to vector<8x128xf32>
    %101 = arith.mulf %96, %100 : vector<8x128xf32>
    %cst_44 = arith.constant 1.000000e+00 : f32
    %102 = vector.broadcast %cst_44 : f32 to vector<8x1xf32>
    %103 = arith.addf %102, %8 : vector<8x1xf32>
    %104 = vector.broadcast %103 : vector<8x1xf32> to vector<8x128xf32>
    %105 = arith.mulf %101, %104 : vector<8x128xf32>
    %106 = vector.broadcast %7 : vector<8x1xf32> to vector<8x128xf32>
    %107 = arith.addf %105, %106 : vector<8x128xf32>
    %c0_45 = arith.constant 0 : index
    %c0_46 = arith.constant 0 : index
    %108 = vector.load %arg4[%c0_45, %c0_46] : memref<16x8xbf16, #tpu.memory_space<vmem>>, vector<16x8xbf16>
    %109 = arith.truncf %107 : vector<8x128xf32> to vector<8x128xbf16>
    %cst_47 = arith.constant dense<0.000000e+00> : vector<16x128xf32>
    %110 = tpu.matmul %108, %109, %cst_47 {dimension_numbers = #tpu.dot_dimension_numbers<[1], [0], [0], [1], [0, 0, 1, 1], [], []>} : vector<16x8xbf16>, vector<8x128xbf16>, vector<16x128xf32> -> vector<16x128xf32>
    %c0_48 = arith.constant 0 : index
    %c0_49 = arith.constant 0 : index
    %111 = vector.load %arg5[%c0_48, %c0_49] : memref<16x1xf32, #tpu.memory_space<vmem>>, vector<16x1xf32>
    %112 = vector.broadcast %111 : vector<16x1xf32> to vector<16x128xf32>
    %113 = arith.addf %110, %112 : vector<16x128xf32>
    %114 = arith.mulf %113, %113 : vector<16x128xf32>
    %115 = arith.mulf %113, %114 : vector<16x128xf32>
    %cst_50 = arith.constant 4.471500e-02 : f32
    %116 = vector.broadcast %cst_50 : f32 to vector<16x128xf32>
    %117 = arith.mulf %116, %115 : vector<16x128xf32>
    %118 = arith.addf %113, %117 : vector<16x128xf32>
    %cst_51 = arith.constant 0.797884583 : f32
    %119 = vector.broadcast %cst_51 : f32 to vector<16x128xf32>
    %120 = arith.mulf %119, %118 : vector<16x128xf32>
    %121 = math.tanh %120 : vector<16x128xf32>
    %cst_52 = arith.constant 1.000000e+00 : f32
    %122 = vector.broadcast %cst_52 : f32 to vector<16x128xf32>
    %123 = arith.addf %122, %121 : vector<16x128xf32>
    %cst_53 = arith.constant 5.000000e-01 : f32
    %124 = vector.broadcast %cst_53 : f32 to vector<16x128xf32>
    %125 = arith.mulf %124, %123 : vector<16x128xf32>
    %126 = arith.mulf %113, %125 : vector<16x128xf32>
    %c0_54 = arith.constant 0 : index
    %c0_55 = arith.constant 0 : index
    %127 = vector.load %arg6[%c0_54, %c0_55] : memref<8x16xbf16, #tpu.memory_space<vmem>>, vector<8x16xbf16>
    %128 = arith.truncf %126 : vector<16x128xf32> to vector<16x128xbf16>
    %cst_56 = arith.constant dense<0.000000e+00> : vector<8x128xf32>
    %129 = tpu.matmul %127, %128, %cst_56 {dimension_numbers = #tpu.dot_dimension_numbers<[1], [0], [0], [1], [0, 0, 1, 1], [], []>} : vector<8x16xbf16>, vector<16x128xbf16>, vector<8x128xf32> -> vector<8x128xf32>
    %c0_57 = arith.constant 0 : index
    %c0_58 = arith.constant 0 : index
    %130 = vector.load %arg7[%c0_57, %c0_58] : memref<8x1xf32, #tpu.memory_space<vmem>>, vector<8x1xf32>
    %131 = vector.broadcast %130 : vector<8x1xf32> to vector<8x128xf32>
    %132 = arith.addf %129, %131 : vector<8x128xf32>
    %133 = vector.broadcast %9 : vector<8x1xf32> to vector<8x128xf32>
    %134 = arith.mulf %133, %132 : vector<8x128xf32>
    %135 = arith.addf %83, %134 : vector<8x128xf32>
    %c0_59 = arith.constant 0 : index
    %c0_60 = arith.constant 0 : index
    %c0_61 = arith.constant 0 : index
    %136 = vector.load %arg8[%c0_59, %c0_60, %c0_61] : memref<1x8x128xf32, #tpu.memory_space<vmem>>, vector<1x8x128xf32>
    %137 = vector.shape_cast %136 : vector<1x8x128xf32> to vector<8x128xf32>
    %138 = vector.shape_cast %135 : vector<8x128xf32> to vector<1x8x128xf32>
    tpu.vector_store %arg8[%c0_59, %c0_60, %c0_61], %138 {strides = array<i32>} : memref<1x8x128xf32, #tpu.memory_space<vmem>>, vector<1x8x128xf32>,
    return
  }
  func.func @transform_0(%arg0: i32) -> (i32, i32, i32) {
    %c0_i32 = arith.constant 0 : i32
    %c0_i32_0 = arith.constant 0 : i32
    %c0_i32_1 = arith.constant 0 : i32
    return %arg0, %c0_i32, %c0_i32_0 : i32, i32, i32
  }
  func.func @transform_1(%arg0: i32) -> (i32, i32, i32) {
    %c0_i32 = arith.constant 0 : i32
    %c0_i32_0 = arith.constant 0 : i32
    %c0_i32_1 = arith.constant 0 : i32
    return %arg0, %c0_i32, %c0_i32_0 : i32, i32, i32
  }
  func.func @transform_2(%arg0: i32) -> (i32, i32, i32) {
    %c0_i32 = arith.constant 0 : i32
    %c0_i32_0 = arith.constant 0 : i32
    %c0_i32_1 = arith.constant 0 : i32
    %c0_i32_2 = arith.constant 0 : i32
    return %c0_i32, %c0_i32_0, %c0_i32_1 : i32, i32, i32
  }
  func.func @transform_3(%arg0: i32) -> (i32, i32) {
    %c0_i32 = arith.constant 0 : i32
    %c0_i32_0 = arith.constant 0 : i32
    %c0_i32_1 = arith.constant 0 : i32
    return %c0_i32, %c0_i32_0 : i32, i32
  }
  func.func @transform_4(%arg0: i32) -> (i32, i32) {
    %c0_i32 = arith.constant 0 : i32
    %c0_i32_0 = arith.constant 0 : i32
    %c0_i32_1 = arith.constant 0 : i32
    return %c0_i32, %c0_i32_0 : i32, i32
  }
  func.func @transform_5(%arg0: i32) -> (i32, i32) {
    %c0_i32 = arith.constant 0 : i32
    %c0_i32_0 = arith.constant 0 : i32
    %c0_i32_1 = arith.constant 0 : i32
    return %c0_i32, %c0_i32_0 : i32, i32
  }
  func.func @transform_6(%arg0: i32) -> (i32, i32) {
    %c0_i32 = arith.constant 0 : i32
    %c0_i32_0 = arith.constant 0 : i32
    %c0_i32_1 = arith.constant 0 : i32
    return %c0_i32, %c0_i32_0 : i32, i32
  }
  func.func @transform_7(%arg0: i32) -> (i32, i32, i32) {
    %c0_i32 = arith.constant 0 : i32
    %c0_i32_0 = arith.constant 0 : i32
    %c0_i32_1 = arith.constant 0 : i32
    return %arg0, %c0_i32, %c0_i32_0 : i32, i32, i32
  }
}

</mosaic_0001>

<bundles_post_ra>
// kernel: tpu_custom_call.1
= control target key start
LH: loop header
LB: loop body
LE: loop exit
PB: predicated region body
PF: predicated region fallthrough
CT: control target
= control target key end

     0   :  { %12 = vsyncpa [#allocation3], 0  ;;  %s2400_s0 = inlined_call_operand.vmem [shape: f32[2,8,128], index: 0, kind: input, shape index: {}]   ;;  %s2401_s1 = inlined_call_operand.vmem [shape: f32[2,48,1], index: 1, kind: input, shape index: {}]   ;;  %s2402_s2 = inlined_call_operand.hbm [shape: bf16[8,128,128], index: 2, kind: input, shape index: {}]   ;;  %s2403_s3 = inlined_call_operand.vmem [shape: bf16[16,8], index: 3, kind: input, shape index: {}]   ;;  %s2404_s4 = inlined_call_operand.vmem [shape: f32[16,1], index: 4, kind: input, shape index: {}]   ;;  %s2405_s5 = inlined_call_operand.vmem [shape: bf16[8,16], index: 5, kind: input, shape index: {}]   ;;  %s2406_s6 = inlined_call_operand.vmem [shape: f32[8,1], index: 6, kind: input, shape index: {}]   ;;  %s2407_s7 = inlined_call_operand.hbm [shape: f32[2,8,128], index: 7, kind: output, shape index: {}]  }
   0x1   :  { %13 = vsyncpa [#allocation4], 0 }
   0x2   :  { %15 = vsyncpa [#allocation4 + $0x1], 0  ;;  %s2124_s24 = smov 0   ;;  %s2126_s25 = smov 0  }
   0x3   :  { %s2128_s26 = smov 0   ;;  %s2130_s27 = smov 0  }
   0x4 LB: > { %s2145_s28 = sadd.s32 4294967295, %s2075_s27   ;;  %s1520_s29 = sadd.s32 4294967294, %s2075_s27   ;;  %s2075_s27 = sphi %s2130_s27, %s2423_s27   ;;  %s2071_s26 = sphi %s2128_s26, %s2422_s26   ;;  %s2067_s25 = sphi %s2126_s25, %s2421_s25   ;;  %s2063_s24 = sphi %s2124_s24, %s2420_s24  }
   0x5   : > { %s2149_s30 = sadd.s32 1, %s2075_s27   ;;  %s185_s8 = sadd.s32 1, %s2071_s26 }
   0x6   : > { %s182_s9 = ssub.s32 %s2075_s27, %s2149_s30  ;;  %p195_p0 = scmp.ne.s32.totalorder %s2071_s26, %s2067_s25 }
   0x7   : > { %p183_p1 = scmp.eq.s32.totalorder %s182_s9, 0  ;;  %p196_p2 = scmp.eq.s32.totalorder %s2145_s28, 1 }
   0x8   : > { %p201_p3 = scmp.ne.s32.totalorder %s2067_s25, %s2063_s24  ;;  %p202_p4 = scmp.eq.s32.totalorder %s1520_s29, 1 }
   0x9   : > { %s2160_s10 = scalar_select %p183_p1, %s2071_s26, %s185_s8  }
   0xa   : > { %p2162_p5 = por %p196_p2, %p195_p0  ;;  %p2166_p6 = por %p202_p4, %p201_p3 }
   0xb   : > { %p1521_p7 = scmp.ge.s32.totalorder %s2075_s27, 1  ;;  %p209_p8 = scmp.lt.s32.totalorder %s2075_s27, 3 }
   0xc   : > { %s2411_s11 = scalar_select %p2162_p5, 1, 0 }
   0xd   : > { %s2412_s12 = scalar_select %p2166_p6, 1, 0 }
   0xe   : > { %p2408_p9 = scmp.eq.s32.totalorder %s2145_s28, 0  ;;  %p2173_p10 = pnand %p1521_p7, %p209_p8 }
   0xf   : > { %s2077_s14 = smov [#allocation2]   ;;  %s1981_s19 = scalar_lea.hbm %s2402_s2, 8192 }
  0x10   : > { %s2413_s13 = scalar_select %p2173_p10, 1, 0 }
  0x11   : > { %s221_s15 = sshll.u32 %s2077_s14, 4  ;;  %p1855_p11 = pneg %p2173_p10  ;;  %s222_s15 = int_to_ptr.vmem [resolvable:$true] %s221_s15 }
  0x12   : > { %p1982_p13 = scmp.ne.s32.totalorder %s2402_s2, %s1981_s19  ;;  %p1988_p3 = scmp.lt.u32.totalorder %s1981_s19, %s2402_s2 }
  0x13   : > { %p2181_p12 = pnand %p2408_p9, %p1855_p11 }
  0x15   : > { %p1983_p0 = pneg %p2181_p12 }
  0x17   : > { %p1984_p1 = pnand %p1983_p0, %p1982_p13 }
  0x19   : > { %p1985_p2 = pneg %p1984_p1 }
  0x1b   : > { %p1990_p4 = pnand %p1988_p3, %p1985_p2 }
  0x1d   : > { %1993 = shalt.err (!%p1990_p4)
}
  0x1e   : > { %s1994_s29 = scalar_lea.vmem %s222_s15, 8192  ;;  %p2002_p9 = scmp.lt.s32.totalorder %s222_s15, %s222_s15 }
  0x1f   : > { %p1995_p7 = scmp.ne.s32.totalorder %s222_s15, %s1994_s29  ;;  %p2003_p6 = scmp.lt.s32.totalorder %s1994_s29, %s1994_s29 }
  0x21   : > { %p1997_p8 = pnand %p1995_p7, %p1983_p0  ;;  %p2004_p5 = por %p2003_p6, %p2002_p9 }
  0x23   : > { %p1998_p11 = pneg %p1997_p8 }
  0x25   : > { %p2005_p10 = pnand %p2004_p5, %p1998_p11 }
  0x27   : > { %2008 = shalt.err (!%p2005_p10)
}
  0x28   : > { %s2078_s8 = smov 64   ;;  %s2079_s9 = smov 4  }
  0x29   : > { %1858 = dma.hbm_to_vmem [thread:$0]  (!%p2181_p12), %s2402_s2, 8192, %s222_s15, [#allocation3], %s2078_s8, %s2078_s8, %s2079_s9  }
  0x2a   : > { %p2415_p13 = scmp.ne.s32.totalorder %s2413_s13, 0 }
  0x2b   : > { %p2416_p1 = scmp.eq.s32.totalorder (!%p2415_p13), %s2145_s28, 0 }
  0x2c   : > { %264 = sbr.rel (%p2415_p13) target bundleno = 1325 (0x52d), region = 48 }
  0x33   : > { %2054 = dma.done.wait (%p2416_p1), [#allocation3], 8192   ;;  %p2417_p0 = pmov %p2416_p1 }
  0x34   : > { %p300_p5 = scmp.lt.s32.totalorder %s2145_s28, 1  ;;  %v2080_v0 = vmov 0   ;;  %v2081_v1 = vmov 0.0   ;;  %v1906_v6 = vld [vmem:[#allocation2] sm:$0xff]   ;;  %v1908_v9 = vld [vmem:[#allocation2 + $0x8] sm:$0xff]   ;;  %v1910_v11 = vld [vmem:[#allocation2 + $0x10] sm:$0xff]  }
  0x35   : > { %2056 = vsyncadd (%p2417_p0), [#allocation3], 4294959104  ;;  %1904 = vset.pattern.permute.xlu1 %v2080_v0  ;;  %1676 = vmatprep.subr.bf16.mxu0 %v2081_v1  ;;  %v1907_v7 = vld [vmem:[#allocation2 + $0x40] sm:$0xff]   ;;  %v1909_v10 = vld [vmem:[#allocation2 + $0x48] sm:$0xff]   ;;  %vm2082_vm0 = vmmov 0   ;;  %vm1221_vm1 = vcmask 1040384  }
  0x36   : > { %s301_s16 = scalar_select %p300_p5, %s2145_s28, 1  ;;  %1696 = vmatprep.subr.bf16.mxu1 %v2081_v1  ;;  %1905 = vset.pattern.permute.xlu0 %v2080_v0  ;;  %v1911_v12 = vld [vmem:[#allocation2 + $0x50] sm:$0xff]   ;;  %v1912_v13 = vld [vmem:[#allocation2 + $0x18] sm:$0xff]   ;;  %v1914_v15 = vld [vmem:[#allocation2 + $0x20] sm:$0xff]   ;;  %vm1223_vm2 = vcmask 1041408   ;;  %vm1225_vm3 = vcmask 1042432  }
  0x37   : > { %1677 = vmatpush3.bf16.xpose.msra.mxu0 %v1906_v6  ;;  %1697 = vmatpush3.bf16.xpose.msra.mxu1 %v1907_v7  ;;  %v1913_v14 = vld [vmem:[#allocation2 + $0x58] sm:$0xff]   ;;  %v1915_v16 = vld [vmem:[#allocation2 + $0x60] sm:$0xff]   ;;  %v1916_v17 = vld [vmem:[#allocation2 + $0x28] sm:$0xff]   ;;  %vm1227_vm4 = vcmask 1043456   ;;  %vm1229_vm5 = vcmask 1044480   ;;  %vm1231_vm6 = vcmask 1045504  }
  0x38   : > { %s1527_s13 = sshll.u32 %s301_s16, 3  ;;  %s1848_s15 = smul.u32 48, %s301_s16  ;;  %1678 = vmatprep.subr.bf16.mxu0 %v2081_v1  ;;  %1698 = vmatprep.subr.bf16.mxu1 %v2081_v1  ;;  %v1917_v18 = vld [vmem:[#allocation2 + $0x68] sm:$0xff]   ;;  %v1918_v19 = vld [vmem:[#allocation2 + $0x30] sm:$0xff]   ;;  %v1920_v21 = vld [vmem:[#allocation2 + $0x38] sm:$0xff]   ;;  %vm1233_vm7 = vcmask 1046528  }
  0x39   : > { %s303_s20 = scalar_lea.vmem %s2400_s0, %s1527_s13  ;;  %1692 = vmatprep.mubr.msk.bf16.mxu0 %vm2082_vm0, %v2081_v1  ;;  %1712 = vmatprep.mubr.msk.bf16.mxu1 %vm2082_vm0, %v2081_v1  ;;  %v1919_v20 = vld [vmem:[#allocation2 + $0x70] sm:$0xff]   ;;  %v1921_v22 = vld [vmem:[#allocation2 + $0x78] sm:$0xff]   ;;  %v1922_v37 = vld [vmem:[#allocation2 + $0x80] sm:$0xff]   ;;  %vm1297_vm8 = vcmask 64512   ;;  %vm1371_vm9 = vcmask 130048   ;;  %s1597_s22 = sshll.u32 %s2145_s28, 7 }
  0x3a   : > { %s2217_s23 = scalar_lea.vmem %s2401_s1, %s1848_s15  ;;  %v2219_v2 = vld [vmem:[%s303_s20] sm:$0xff]  ;;  %v1924_v41 = vld [vmem:[#allocation2 + $0x88] sm:$0xff]   ;;  %v1926_v43 = vld [vmem:[#allocation2 + $0x90] sm:$0xff]   ;;  %s297_s20 = sand.u32 1, %s2067_s25  }
  0x3b   : > { %v312_v3 = vld [vmem:[%s2217_s23 + $0x8] sm:$0xff]  ;;  %317 = vadd.xlane.f32.xlu0 %v2219_v2  ;;  %v319_v4 = vmul.f32 %v2219_v2, %v2219_v2  ;;  %v311_v8 = vld [vmem:[%s2217_s23] sm:$0xff]  ;;  %v1927_v44 = vld [vmem:[#allocation2 + $0xd0] sm:$0xff]   ;;  %s1526_s21 = sshll.u32 %s297_s20, 3  ;;  %s2358_s14 = scalar_lea.hbm %s2407_s7, %s1597_s22 }
  0x3c   : > { %v330_v5 = vadd.f32 1.0, %v312_v3  ;;  %v1923_v39 = vld [vmem:[#allocation2 + $0xc0] sm:$0xff]   ;;  %v1925_v42 = vld [vmem:[#allocation2 + $0xc8] sm:$0xff]   ;;  %v1928_v45 = vld [vmem:[#allocation2 + $0x98] sm:$0xff]   ;;  %s1424_s17 = scalar_lea.sflag [#allocation4], %s297_s20  ;;  %p2418_p9 = scmp.ne.s32.totalorder %s2411_s11, 0 }
  0x3d   : > { %v1929_v46 = vld [vmem:[#allocation2 + $0xd8] sm:$0xff]   ;;  %v1930_v47 = vld [vmem:[#allocation2 + $0xa0] sm:$0xff]   ;;  %v1932_v49 = vld [vmem:[#allocation2 + $0xa8] sm:$0xff]   ;;  %s2083_s28 = smov [#allocation5]  }
  0x3e   : > { %333 = vperm.xlu1 %1904, %v330_v5   ;;  %v1931_v48 = vld [vmem:[#allocation2 + $0xe0] sm:$0xff]   ;;  %v1933_v50 = vld [vmem:[#allocation2 + $0xe8] sm:$0xff]   ;;  %v1934_v51 = vld [vmem:[#allocation2 + $0xb0] sm:$0xff]   ;;  %s2013_s13 = sshll.u32 %s2083_s28, 4  ;;  %s2014_s13 = int_to_ptr.vmem [resolvable:$false] %s2013_s13 }
  0x3f   : > { %320 = vadd.xlane.f32.xlu0 %v319_v4  ;;  %1679 = vmatpush3.bf16.xpose.msra.mxu0 %v1908_v9  ;;  %v1935_v52 = vld [vmem:[#allocation2 + $0xf0] sm:$0xff]   ;;  %v1936_v53 = vld [vmem:[#allocation2 + $0xb8] sm:$0xff]   ;;  %v1938_v55 = vld [vmem:[#allocation2 + $0x100] sm:$0xff]   ;;  %s2015_s15 = scalar_lea.vmem %s2014_s13, 256 }
  0x40   : > { %1699 = vmatpush3.bf16.xpose.msra.mxu1 %v1909_v10  ;;  %1680 = vmatprep.subr.bf16.mxu0 %v2081_v1  ;;  %v1937_v54 = vld [vmem:[#allocation2 + $0xf8] sm:$0xff]   ;;  %v1939_v57 = vld [vmem:[#allocation2 + $0x140] sm:$0xff]   ;;  %v1940_v59 = vld [vmem:[#allocation2 + $0x108] sm:$0xff]  }
  0x41   : > { %1700 = vmatprep.subr.bf16.mxu1 %v2081_v1  ;;  %v1941_v60 = vld [vmem:[#allocation2 + $0x148] sm:$0xff]   ;;  %v1942_v61 = vld [vmem:[#allocation2 + $0x110] sm:$0xff]   ;;  %v1944_v63 = vld [vmem:[#allocation2 + $0x118] sm:$0xff]  }
  0x42   : > { %339 = vperm.xlu1 %1904, %v311_v8   ;;  %v1943_v62 = vld [vmem:[#allocation2 + $0x150] sm:$0xff]   ;;  %v1945_v0 = vld [vmem:[#allocation2 + $0x158] sm:$0xff]   ;;  %v1946_v3 = vld [vmem:[#allocation2 + $0x120] sm:$0xff]  }
  0x43   : > { %v1947_v4 = vld [vmem:[#allocation2 + $0x160] sm:$0xff]   ;;  %v1948_v5 = vld [vmem:[#allocation2 + $0x128] sm:$0xff]   ;;  %v1950_v7 = vld [vmem:[#allocation2 + $0x130] sm:$0xff]  }
  0x44   : > { %v1949_v6 = vld [vmem:[#allocation2 + $0x168] sm:$0xff]   ;;  %v1951_v8 = vld [vmem:[#allocation2 + $0x170] sm:$0xff]   ;;  %v1952_v9 = vld [vmem:[#allocation2 + $0x138] sm:$0xff]  }
  0x45   : > { %v1953_v10 = vld [vmem:[#allocation2 + $0x178] sm:$0xff]  }
  0x47   : > { %1681 = vmatpush3.bf16.xpose.msra.mxu0 %v1910_v11  ;;  %v1954_v11 = vld [vmem:[#allocation2 + $0x180] sm:$0xff]  }
  0x48   : > { %1701 = vmatpush3.bf16.xpose.msra.mxu1 %v1911_v12  ;;  %1682 = vmatprep.subr.bf16.mxu0 %v2081_v1 }
  0x49   : > { %1702 = vmatprep.subr.bf16.mxu1 %v2081_v1 }
  0x4f   : > { %1683 = vmatpush3.bf16.xpose.msra.mxu0 %v1912_v13  ;;  %v1955_v13 = vld [vmem:[#allocation2 + $0x1c0] sm:$0xff]  }
  0x50   : > { %1703 = vmatpush3.bf16.xpose.msra.mxu1 %v1913_v14  ;;  %1684 = vmatprep.subr.bf16.mxu0 %v2081_v1 }
  0x51   : > { %1704 = vmatprep.subr.bf16.mxu1 %v2081_v1 }
  0x57   : > { %1685 = vmatpush3.bf16.xpose.msra.mxu0 %v1914_v15  ;;  %v1956_v15 = vld [vmem:[#allocation2 + $0x188] sm:$0xff]  }
  0x58   : > { %1705 = vmatpush3.bf16.xpose.msra.mxu1 %v1915_v16  ;;  %1686 = vmatprep.subr.bf16.mxu0 %v2081_v1  ;;  %v1957_v16 = vld [vmem:[#allocation2 + $0x1c8] sm:$0xff]  }
  0x59   : > { %1706 = vmatprep.subr.bf16.mxu1 %v2081_v1 }
  0x5f   : > { %1687 = vmatpush3.bf16.xpose.msra.mxu0 %v1916_v17  ;;  %v1958_v17 = vld [vmem:[#allocation2 + $0x190] sm:$0xff]  }
  0x60   : > { %1707 = vmatpush3.bf16.xpose.msra.mxu1 %v1917_v18  ;;  %1688 = vmatprep.subr.bf16.mxu0 %v2081_v1  ;;  %v1959_v18 = vld [vmem:[#allocation2 + $0x1d0] sm:$0xff]  }
  0x61   : > { %1708 = vmatprep.subr.bf16.mxu1 %v2081_v1 }
  0x67   : > { %1689 = vmatpush3.bf16.xpose.msra.mxu0 %v1918_v19  ;;  %v1960_v19 = vld [vmem:[#allocation2 + $0x198] sm:$0xff]  }
  0x68   : > { %1709 = vmatpush3.bf16.xpose.msra.mxu1 %v1919_v20  ;;  %1690 = vmatprep.subr.bf16.mxu0 %v2081_v1  ;;  %v1961_v20 = vld [vmem:[#allocation2 + $0x1d8] sm:$0xff]  }
  0x69   : > { %1710 = vmatprep.subr.bf16.mxu1 %v2081_v1 }
  0x6f   : > { %1691 = vmatpush3.bf16.xpose.msra.mxu0 %v1920_v21  ;;  %v313_v21 = vld [vmem:[%s2217_s23 + $0x10] sm:$0xff] }
  0x70   : > { %1711 = vmatpush3.bf16.xpose.msra.mxu1 %v1921_v22  ;;  %1716 = vmatprep.subr.bf16.mxu0 %v2081_v1  ;;  %v314_v22 = vld [vmem:[%s2217_s23 + $0x18] sm:$0xff] }
  0x71   : > { %1736 = vmatprep.subr.bf16.mxu1 %v2081_v1  ;;  %1246 = vperm.xlu0 %1905, %v313_v21  }
  0x75   : > { %1273 = vperm.xlu0 %1905, %v314_v22  }
  0xbd   : > { %v334_v30 = vpop.permute.xlu1 %333 }
  0xc1   : > { %v340_v35 = vpop.permute.xlu1 %339 }
  0xc8   : > { %v318_v23 = vpop.xlane.xlu0 %317 }
  0xc9   : > { %v322_v24 = vmul.f32 0.0078125, %v318_v23  ;;  %v1962_v23 = vld [vmem:[#allocation2 + $0x1a0] sm:$0xff]  }
  0xcb   : > { %v324_v26 = vmul.f32 %v322_v24, %v322_v24  ;;  %v326_v31 = vsub.f32 %v2219_v2, %v322_v24  ;;  %v1280_v24 = vld [vmem:[%s2404_s4] sm:$0xff] }
  0xcc   : > { %v321_v25 = vpop.xlane.xlu0 %320  ;;  %1284 = vperm.xlu0 %1905, %v1280_v24  }
  0xcd   : > { %v323_v27 = vmul.f32 0.0078125, %v321_v25  ;;  %v1963_v25 = vld [vmem:[#allocation2 + $0x1e0] sm:$0xff]  }
  0xcf   : > { %v325_v28 = vsub.f32 %v323_v27, %v324_v26  ;;  %v1281_v26 = vld [vmem:[%s2404_s4 + $0x8] sm:$0xff] }
  0xd0   : > { %v1964_v27 = vld [vmem:[#allocation2 + $0x1a8] sm:$0xff]   ;;  %1289 = vperm.xlu0 %1905, %v1281_v26  }
  0xd1   : > { %v327_v29 = vadd.f32 1e-05, %v325_v28  ;;  %v1365_v28 = vld [vmem:[%s2406_s6] sm:$0xff] }
  0xd3   : > { %1971 = vrsqrt.f32 %v327_v29  ;;  %v1965_v29 = vld [vmem:[#allocation2 + $0x1e8] sm:$0xff]  }
  0xd4   : > { %1368 = vperm.xlu0 %1905, %v1365_v28  }
  0xdd   : > { %v1972_v32 = vpop.eup %1971 }
  0xde   : > { %v329_v33 = vmul.f32 %v1972_v32, %v326_v31  ;;  %v1967_v31 = vld [vmem:[#allocation2 + $0x1f0] sm:$0xff]   ;;  %v1968_v32 = vld [vmem:[#allocation2 + $0x1b8] sm:$0xff]  }
  0xe0   : > { %v336_v34 = vmul.f32 %v334_v30, %v329_v33  ;;  %v1966_v30 = vld [vmem:[#allocation2 + $0x1b0] sm:$0xff]   ;;  %v1969_v33 = vld [vmem:[#allocation2 + $0x1f8] sm:$0xff]  }
  0xe2   : > { %v342_v36 = vadd.f32 %v340_v35, %v336_v34 }
  0xe4   : > { %v2247_v38 = vpack.c.bf16 %v342_v36, %v342_v36 }
  0xe6   : > { %1693 = vmatmul.mubr.bf16.vlgmr.msra.gmra.mrb[0].mxu0 %v2247_v38  ;;  %v2251_v40 = vshrl.u32 %v2247_v38, 16  ;;  %v575_v56 = vrot.slane %v2247_v38, 1  ;;  %v789_v12 = vrot.slane %v2247_v38, 2  ;;  %v1003_v34 = vrot.slane %v2247_v38, 3 }
  0xe7   : > { %1717 = vmatpush3.bf16.xpose.msra.mxu0 %v1922_v37  ;;  %1732 = vmatprep.mubr.msk.bf16.mxu0 %vm2082_vm0, %v2081_v1 }
  0xe8   : > { %1713 = vmatmul.mubr.bf16.vlgmr.msra.gmra.mrb[0].mxu1 %v2251_v40  ;;  %1718 = vmatprep.subr.bf16.mxu0 %v2081_v1  ;;  %v682_v58 = vrot.slane %v2251_v40, 1  ;;  %v896_v14 = vrot.slane %v2251_v40, 2  ;;  %v1110_v35 = vrot.slane %v2251_v40, 3 }
  0xe9   : > { %1737 = vmatpush3.bf16.xpose.msra.mxu1 %v1923_v39  ;;  %1752 = vmatprep.mubr.msk.bf16.mxu1 %vm2082_vm0, %v2081_v1 }
  0xea   : > { %1738 = vmatprep.subr.bf16.mxu1 %v2081_v1 }
  0xef   : > { %1719 = vmatpush3.bf16.xpose.msra.mxu0 %v1924_v41 }
  0xf0   : > { %1720 = vmatprep.subr.bf16.mxu0 %v2081_v1  ;;  %v1247_v28 = vpop.permute.xlu0 %1246 }
  0xf1   : > { %1739 = vmatpush3.bf16.xpose.msra.mxu1 %v1925_v42 }
  0xf2   : > { %1740 = vmatprep.subr.bf16.mxu1 %v2081_v1 }
  0xf7   : > { %1721 = vmatpush3.bf16.xpose.msra.mxu0 %v1926_v43 }
  0xf8   : > { %1722 = vmatprep.subr.bf16.mxu0 %v2081_v1 }
  0xf9   : > { %1741 = vmatpush3.bf16.xpose.msra.mxu1 %v1927_v44 }
  0xfa   : > { %1742 = vmatprep.subr.bf16.mxu1 %v2081_v1 }
  0xff   : > { %1723 = vmatpush3.bf16.xpose.msra.mxu0 %v1928_v45 }
 0x100   : > { %1724 = vmatprep.subr.bf16.mxu0 %v2081_v1 }
 0x101   : > { %1743 = vmatpush3.bf16.xpose.msra.mxu1 %v1929_v46 }
 0x102   : > { %1744 = vmatprep.subr.bf16.mxu1 %v2081_v1 }
 0x107   : > { %1725 = vmatpush3.bf16.xpose.msra.mxu0 %v1930_v47 }
 0x108   : > { %1726 = vmatprep.subr.bf16.mxu0 %v2081_v1 }
 0x109   : > { %1745 = vmatpush3.bf16.xpose.msra.mxu1 %v1931_v48 }
 0x10a   : > { %1746 = vmatprep.subr.bf16.mxu1 %v2081_v1 }
 0x10f   : > { %1727 = vmatpush3.bf16.xpose.msra.mxu0 %v1932_v49 }
 0x110   : > { %1728 = vmatprep.subr.bf16.mxu0 %v2081_v1 }
 0x111   : > { %1747 = vmatpush3.bf16.xpose.msra.mxu1 %v1933_v50 }
 0x112   : > { %1748 = vmatprep.subr.bf16.mxu1 %v2081_v1 }
 0x117   : > { %1729 = vmatpush3.bf16.xpose.msra.mxu0 %v1934_v51 }
 0x118   : > { %1730 = vmatprep.subr.bf16.mxu0 %v2081_v1 }
 0x119   : > { %1749 = vmatpush3.bf16.xpose.msra.mxu1 %v1935_v52 }
 0x11a   : > { %1750 = vmatprep.subr.bf16.mxu1 %v2081_v1 }
 0x11f   : > { %1731 = vmatpush3.bf16.xpose.msra.mxu0 %v1936_v53 }
 0x120   : > { %1756 = vmatprep.subr.bf16.mxu0 %v2081_v1 }
 0x121   : > { %1751 = vmatpush3.bf16.xpose.msra.mxu1 %v1937_v54 }
 0x122   : > { %1776 = vmatprep.subr.bf16.mxu1 %v2081_v1 }
 0x126   : > { %1733 = vmatmul.mubr.bf16.vlgmr.msra.gmra.mrb[4].mxu0 %v575_v56 }
 0x127   : > { %1757 = vmatpush3.bf16.xpose.msra.mxu0 %v1938_v55  ;;  %1772 = vmatprep.mubr.msk.bf16.mxu0 %vm2082_vm0, %v2081_v1 }
 0x128   : > { %1753 = vmatmul.mubr.bf16.vlgmr.msra.gmra.mrb[4].mxu1 %v682_v58  ;;  %1758 = vmatprep.subr.bf16.mxu0 %v2081_v1 }
 0x129   : > { %1777 = vmatpush3.bf16.xpose.msra.mxu1 %v1939_v57  ;;  %1792 = vmatprep.mubr.msk.bf16.mxu1 %vm2082_vm0, %v2081_v1 }
 0x12a   : > { %1778 = vmatprep.subr.bf16.mxu1 %v2081_v1 }
 0x12f   : > { %1759 = vmatpush3.bf16.xpose.msra.mxu0 %v1940_v59 }
 0x130   : > { %1760 = vmatprep.subr.bf16.mxu0 %v2081_v1 }
 0x131   : > { %1779 = vmatpush3.bf16.xpose.msra.mxu1 %v1941_v60 }
 0x132   : > { %1780 = vmatprep.subr.bf16.mxu1 %v2081_v1 }
 0x137   : > { %1761 = vmatpush3.bf16.xpose.msra.mxu0 %v1942_v61 }
 0x138   : > { %1762 = vmatprep.subr.bf16.mxu0 %v2081_v1 }
 0x139   : > { %1781 = vmatpush3.bf16.xpose.msra.mxu1 %v1943_v62 }
 0x13a   : > { %1782 = vmatprep.subr.bf16.mxu1 %v2081_v1 }
 0x13f   : > { %1763 = vmatpush3.bf16.xpose.msra.mxu0 %v1944_v63 }
 0x140   : > { %1764 = vmatprep.subr.bf16.mxu0 %v2081_v1 }
 0x141   : > { %1783 = vmatpush3.bf16.xpose.msra.mxu1 %v1945_v0 }
 0x142   : > { %1784 = vmatprep.subr.bf16.mxu1 %v2081_v1 }
 0x147   : > { %1765 = vmatpush3.bf16.xpose.msra.mxu0 %v1946_v3 }
 0x148   : > { %1766 = vmatprep.subr.bf16.mxu0 %v2081_v1 }
 0x149   : > { %1785 = vmatpush3.bf16.xpose.msra.mxu1 %v1947_v4 }
 0x14a   : > { %1786 = vmatprep.subr.bf16.mxu1 %v2081_v1 }
 0x14f   : > { %1767 = vmatpush3.bf16.xpose.msra.mxu0 %v1948_v5 }
 0x150   : > { %1768 = vmatprep.subr.bf16.mxu0 %v2081_v1 }
 0x151   : > { %1787 = vmatpush3.bf16.xpose.msra.mxu1 %v1949_v6 }
 0x152   : > { %1788 = vmatprep.subr.bf16.mxu1 %v2081_v1 }
 0x157   : > { %1769 = vmatpush3.bf16.xpose.msra.mxu0 %v1950_v7 }
 0x158   : > { %1770 = vmatprep.subr.bf16.mxu0 %v2081_v1 }
 0x159   : > { %1789 = vmatpush3.bf16.xpose.msra.mxu1 %v1951_v8 }
 0x15a   : > { %1790 = vmatprep.subr.bf16.mxu1 %v2081_v1 }
 0x15f   : > { %1771 = vmatpush3.bf16.xpose.msra.mxu0 %v1952_v9 }
 0x160   : > { %1796 = vmatprep.subr.bf16.mxu0 %v2081_v1 }
 0x161   : > { %1791 = vmatpush3.bf16.xpose.msra.mxu1 %v1953_v10 }
 0x162   : > { %1816 = vmatprep.subr.bf16.mxu1 %v2081_v1 }
 0x166   : > { %1773 = vmatmul.mubr.bf16.vlgmr.msra.gmra.mrb[8].mxu0 %v789_v12 }
 0x167   : > { %1797 = vmatpush3.bf16.xpose.msra.mxu0 %v1954_v11  ;;  %1812 = vmatprep.mubr.msk.bf16.mxu0 %vm2082_vm0, %v2081_v1 }
 0x168   : > { %1793 = vmatmul.mubr.bf16.vlgmr.msra.gmra.mrb[8].mxu1 %v896_v14  ;;  %1798 = vmatprep.subr.bf16.mxu0 %v2081_v1 }
 0x169   : > { %1817 = vmatpush3.bf16.xpose.msra.mxu1 %v1955_v13  ;;  %1832 = vmatprep.mubr.msk.bf16.mxu1 %vm2082_vm0, %v2081_v1 }
 0x16a   : > { %1818 = vmatprep.subr.bf16.mxu1 %v2081_v1 }
 0x16f   : > { %1799 = vmatpush3.bf16.xpose.msra.mxu0 %v1956_v15 }
 0x170   : > { %1800 = vmatprep.subr.bf16.mxu0 %v2081_v1 }
 0x171   : > { %1819 = vmatpush3.bf16.xpose.msra.mxu1 %v1957_v16 }
 0x172   : > { %1820 = vmatprep.subr.bf16.mxu1 %v2081_v1 }
 0x177   : > { %1801 = vmatpush3.bf16.xpose.msra.mxu0 %v1958_v17 }
 0x178   : > { %1802 = vmatprep.subr.bf16.mxu0 %v2081_v1 }
 0x179   : > { %1821 = vmatpush3.bf16.xpose.msra.mxu1 %v1959_v18 }
 0x17a   : > { %1822 = vmatprep.subr.bf16.mxu1 %v2081_v1 }
 0x17f   : > { %1803 = vmatpush3.bf16.xpose.msra.mxu0 %v1960_v19 }
 0x180   : > { %1804 = vmatprep.subr.bf16.mxu0 %v2081_v1 }
 0x181   : > { %1823 = vmatpush3.bf16.xpose.msra.mxu1 %v1961_v20 }
 0x182   : > { %1824 = vmatprep.subr.bf16.mxu1 %v2081_v1 }
 0x187   : > { %1805 = vmatpush3.bf16.xpose.msra.mxu0 %v1962_v23 }
 0x188   : > { %1806 = vmatprep.subr.bf16.mxu0 %v2081_v1 }
 0x189   : > { %1825 = vmatpush3.bf16.xpose.msra.mxu1 %v1963_v25 }
 0x18a   : > { %1826 = vmatprep.subr.bf16.mxu1 %v2081_v1 }
 0x18f   : > { %1807 = vmatpush3.bf16.xpose.msra.mxu0 %v1964_v27 }
 0x190   : > { %1808 = vmatprep.subr.bf16.mxu0 %v2081_v1 }
 0x191   : > { %1827 = vmatpush3.bf16.xpose.msra.mxu1 %v1965_v29 }
 0x192   : > { %1828 = vmatprep.subr.bf16.mxu1 %v2081_v1 }
 0x197   : > { %1809 = vmatpush3.bf16.xpose.msra.mxu0 %v1966_v30 }
 0x198   : > { %1810 = vmatprep.subr.bf16.mxu0 %v2081_v1 }
 0x199   : > { %1829 = vmatpush3.bf16.xpose.msra.mxu1 %v1967_v31 }
 0x19a   : > { %1830 = vmatprep.subr.bf16.mxu1 %v2081_v1 }
 0x19f   : > { %1811 = vmatpush3.bf16.xpose.msra.mxu0 %v1968_v32  ;;  %v315_v32 = vld [vmem:[%s2217_s23 + $0x20] sm:$0xff] }
 0x1a0   : > { %1836 = vmatprep.subr.bf16.mxu0 %v2081_v1 }
 0x1a1   : > { %1831 = vmatpush3.bf16.xpose.msra.mxu1 %v1969_v33  ;;  %v1264_v33 = vadd.f32 1.0, %v315_v32 }
 0x1a2   : > { %1842 = vmatprep.subr.bf16.mxu1 %v2081_v1 }
 0x1a6   : > { %1813 = vmatmul.mubr.bf16.vlgmr.msra.gmra.mrb[12].mxu0 %v1003_v34  ;;  %v316_v34 = vld [vmem:[%s2217_s23 + $0x28] sm:$0xff]  ;;  %s299_s23 = scalar_lea.vmem [#allocation5], %s1526_s21 }
 0x1a7   : > { %1838 = vmatprep.mubr.msk.bf16.mxu0 %vm2082_vm0, %v2081_v1  ;;  %s1437_s29 = sshll.u32 %s299_s23, 4  ;;  %s2360_s29 = int_to_ptr.vmem [resolvable:$true] %s1437_s29 }
 0x1a8   : > { %1833 = vmatmul.mubr.bf16.vlgmr.msra.gmra.mrb[12].mxu1 %v1110_v35  ;;  %s2009_s16 = scalar_lea.vmem %s2360_s29, 128  ;;  %p2016_p2 = scmp.lt.s32.totalorder %s2360_s29, %s2014_s13 }
 0x1a9   : > { %1844 = vmatprep.mubr.msk.bf16.mxu1 %vm2082_vm0, %v2081_v1  ;;  %p2010_p6 = scmp.ne.s32.totalorder %s2360_s29, %s2009_s16  ;;  %p2017_p3 = scmp.lt.s32.totalorder %s2015_s15, %s2009_s16 }
 0x1ab   : > { %p2011_p10 = pnand %p2010_p6, %p2418_p9  ;;  %p2018_p4 = por %p2017_p3, %p2016_p2 }
 0x1ad   : > { %p2012_p12 = pneg %p2011_p10 }
 0x1af   : > { %p2019_p7 = pnand %p2018_p4, %p2012_p12 }
 0x1b9   : > { %v442_v36 = vpop.f32.mrb[0].mxu0 }
 0x1ba   : > { %v1694_v37 = vpop.f32.mrb[1].mxu0 }
 0x1bb   : > { %v445_v39 = vpop.f32.mrb[2].mxu0  ;;  %v551_v41 = vpop.f32.mrb[0].mxu1 }
 0x1bc   : > { %v1201_v42 = vrot.slane %v551_v41, 7  ;;  %v1695_v43 = vpop.f32.mrb[3].mxu0  ;;  %v1714_v44 = vpop.f32.mrb[1].mxu1 }
 0x1bd   : > { %v554_v45 = vpop.f32.mrb[2].mxu1 }
 0x1be   : > { %v1222_v38 = vsel %vm1221_vm1, %v442_v36, %v1201_v42  ;;  %v1715_v46 = vpop.f32.mrb[3].mxu1 }
 0x1f9   : > { %v659_v47 = vpop.f32.mrb[4].mxu0 }
 0x1fa   : > { %v1204_v40 = vrot.slane %v659_v47, 6  ;;  %v1734_v48 = vpop.f32.mrb[5].mxu0  ;;  %v1274_v47 = vpop.permute.xlu0 %1273 }
 0x1fb   : > { %v662_v49 = vpop.f32.mrb[6].mxu0  ;;  %v766_v50 = vpop.f32.mrb[4].mxu1 }
 0x1fc   : > { %v1224_v51 = vsel %vm1223_vm2, %v1222_v38, %v1204_v40  ;;  %v1207_v1 = vrot.slane %v766_v50, 5  ;;  %v1735_v52 = vpop.f32.mrb[7].mxu0  ;;  %v1754_v53 = vpop.f32.mrb[5].mxu1  ;;  %v1970_v50 = vld [vmem:[%s2403_s3] sm:$0xff]  }
 0x1fd   : > { %v769_v54 = vpop.f32.mrb[6].mxu1 }
 0x1fe   : > { %v1226_v55 = vsel %vm1225_vm3, %v1224_v51, %v1207_v1  ;;  %v1755_v56 = vpop.f32.mrb[7].mxu1  ;;  %v1285_v51 = vpop.permute.xlu0 %1284 }
 0x202   : > { %v1290_v54 = vpop.permute.xlu0 %1289 }
 0x239   : > { %v873_v57 = vpop.f32.mrb[8].mxu0 }
 0x23a   : > { %v1210_v58 = vrot.slane %v873_v57, 4  ;;  %v1774_v59 = vpop.f32.mrb[9].mxu0 }
 0x23b   : > { %v876_v60 = vpop.f32.mrb[10].mxu0  ;;  %v980_v61 = vpop.f32.mrb[8].mxu1 }
 0x23c   : > { %v1228_v62 = vsel %vm1227_vm4, %v1226_v55, %v1210_v58  ;;  %v1213_v63 = vrot.slane %v980_v61, 3  ;;  %v1775_v0 = vpop.f32.mrb[11].mxu0  ;;  %v1794_v3 = vpop.f32.mrb[9].mxu1 }
 0x23d   : > { %v983_v4 = vpop.f32.mrb[10].mxu1 }
 0x23e   : > { %v1230_v5 = vsel %vm1229_vm5, %v1228_v62, %v1213_v63  ;;  %v1795_v6 = vpop.f32.mrb[11].mxu1 }
 0x279   : > { %v1087_v7 = vpop.f32.mrb[12].mxu0 }
 0x27a   : > { %v1216_v8 = vrot.slane %v1087_v7, 2  ;;  %v1814_v9 = vpop.f32.mrb[13].mxu0 }
 0x27b   : > { %v1090_v10 = vpop.f32.mrb[14].mxu0  ;;  %v1194_v11 = vpop.f32.mrb[12].mxu1 }
 0x27c   : > { %v1232_v12 = vsel %vm1231_vm6, %v1230_v5, %v1216_v8  ;;  %v1219_v13 = vrot.slane %v1194_v11, 1  ;;  %v1815_v14 = vpop.f32.mrb[15].mxu0  ;;  %v1834_v15 = vpop.f32.mrb[13].mxu1 }
 0x27d   : > { %v1197_v16 = vpop.f32.mrb[14].mxu1  ;;  %v1363_v15 = vld [vmem:[%s2405_s5] sm:$0xf] }
 0x27e   : > { %v1234_v17 = vsel %vm1233_vm7, %v1232_v12, %v1219_v13  ;;  %v1835_v18 = vpop.f32.mrb[15].mxu1  ;;  %v1369_v16 = vpop.permute.xlu0 %1368 }
 0x27f   : > { %v1235_v19 = vmul.f32 %v1234_v17, %v1234_v17 }
 0x281   : > { %v1236_v20 = vmul.f32 %v1235_v19, %v1234_v17 }
 0x283   : > { %v1237_v21 = vmul.f32 0.044715, %v1236_v20 }
 0x285   : > { %v1238_v22 = vadd.f32 %v1237_v21, %v1234_v17 }
 0x287   : > { %v1239_v23 = vmul.f32 0.7978846, %v1238_v22 }
 0x289   : > { %1973 = vtanh.f32 %v1239_v23 }
 0x293   : > { %v1974_v24 = vpop.eup %1973 }
 0x294   : > { %v1241_v25 = vadd.f32 1.0, %v1974_v24 }
 0x296   : > { %v1242_v26 = vmul.f32 0.5, %v1241_v25 }
 0x298   : > { %v1243_v27 = vmul.f32 %v1242_v26, %v1234_v17 }
 0x29a   : > { %v1249_v29 = vmul.f32 %v1247_v28, %v1243_v27 }
 0x29c   : > { %v2337_v30 = vadd.f32 %v1249_v29, %v2219_v2 }
 0x29e   : > { %1251 = vadd.xlane.f32.xlu1 %v2337_v30  ;;  %v1253_v31 = vmul.f32 %v2337_v30, %v2337_v30 }
 0x2a2   : > { %1254 = vadd.xlane.f32.xlu1 %v1253_v31 }
 0x2b3   : > { %1267 = vperm.xlu1 %1904, %v1264_v33  }
 0x2b7   : > { %1417 = vperm.xlu1 %1904, %v316_v34  }
 0x32b   : > { %v1252_v35 = vpop.xlane.xlu1 %1251 }
 0x32c   : > { %v1256_v36 = vmul.f32 0.0078125, %v1252_v35 }
 0x32e   : > { %v1258_v39 = vmul.f32 %v1256_v36, %v1256_v36  ;;  %v1260_v2 = vsub.f32 %v2337_v30, %v1256_v36 }
 0x32f   : > { %v1255_v37 = vpop.xlane.xlu1 %1254 }
 0x330   : > { %v1257_v41 = vmul.f32 0.0078125, %v1255_v37 }
 0x332   : > { %v1259_v42 = vsub.f32 %v1257_v41, %v1258_v39 }
 0x333   : > { %v1268_v38 = vpop.permute.xlu1 %1267 }
 0x334   : > { %v1261_v43 = vadd.f32 1e-05, %v1259_v42 }
 0x336   : > { %1975 = vrsqrt.f32 %v1261_v43 }
 0x337   : > { %v1418_v20 = vpop.permute.xlu1 %1417 }
 0x340   : > { %v1976_v44 = vpop.eup %1975 }
 0x341   : > { %v1263_v45 = vmul.f32 %v1976_v44, %v1260_v2 }
 0x343   : > { %v1270_v46 = vmul.f32 %v1268_v38, %v1263_v45 }
 0x345   : > { %v1276_v40 = vadd.f32 %v1274_v47, %v1270_v46 }
 0x347   : > { %v1279_v48 = vpack.c.bf16 %v1276_v40, %v1276_v40 }
 0x349   : > { %v1302_v49 = vsel %vm1227_vm4, %v1279_v48, 0 }
 0x34a   : > { %1837 = vmatpush3.bf16.msra.mxu0 %v1302_v49 }
 0x34d   : > { %1839 = vmatmul.mubr.msk.bf16.vlgmr.msra.gmra.mrb[16].mxu0 %vm1297_vm8, %v1970_v50 }
 0x420   : > { %v1338_v1 = vpop.f32.mrb[16].mxu0 }
 0x421   : > { %v1339_v52 = vadd.f32 %v1338_v1, %v1285_v51  ;;  %v1840_v53 = vpop.f32.mrb[17].mxu0 }
 0x422   : > { %v1341_v55 = vpop.f32.mrb[18].mxu0 }
 0x423   : > { %v1345_v56 = vmul.f32 %v1339_v52, %v1339_v52  ;;  %v1342_v57 = vadd.f32 %v1341_v55, %v1290_v54  ;;  %v1841_v58 = vpop.f32.mrb[19].mxu0 }
 0x425   : > { %v1347_v59 = vmul.f32 %v1345_v56, %v1339_v52  ;;  %v1346_v60 = vmul.f32 %v1342_v57, %v1342_v57 }
 0x427   : > { %v1349_v61 = vmul.f32 0.044715, %v1347_v59  ;;  %v1348_v62 = vmul.f32 %v1346_v60, %v1342_v57 }
 0x429   : > { %v1351_v63 = vadd.f32 %v1349_v61, %v1339_v52  ;;  %v1350_v0 = vmul.f32 0.044715, %v1348_v62 }
 0x42b   : > { %v1353_v3 = vmul.f32 0.7978846, %v1351_v63  ;;  %v1352_v4 = vadd.f32 %v1350_v0, %v1342_v57 }
 0x42d   : > { %1977 = vtanh.f32 %v1353_v3  ;;  %v1354_v5 = vmul.f32 0.7978846, %v1352_v4 }
 0x42f   : > { %1979 = vtanh.f32 %v1354_v5 }
 0x437   : > { %v1978_v6 = vpop.eup %1977 }
 0x438   : > { %v1357_v7 = vadd.f32 1.0, %v1978_v6 }
 0x439   : > { %v1980_v8 = vpop.eup %1979 }
 0x43a   : > { %v1359_v9 = vmul.f32 0.5, %v1357_v7  ;;  %v1358_v10 = vadd.f32 1.0, %v1980_v8 }
 0x43c   : > { %v1360_v11 = vmul.f32 0.5, %v1358_v10  ;;  %v1361_v12 = vmul.f32 %v1359_v9, %v1339_v52 }
 0x43e   : > { %v1362_v13 = vmul.f32 %v1360_v11, %v1342_v57 }
 0x440   : > { %v1364_v14 = vpack.c.bf16 %v1362_v13, %v1361_v12 }
 0x442   : > { %1843 = vmatpush3.bf16.msra.mxu1 %v1364_v14 }
 0x445   : > { %1845 = vmatmul.mubr.msk.bf16.vlgmr.msra.gmra.mrb[16].mxu1 %vm1371_vm9, %v1363_v15 }
 0x518   : > { %v1409_v17 = vpop.f32.mrb[16].mxu1 }
 0x519   : > { %v1410_v18 = vadd.f32 %v1409_v17, %v1369_v16  ;;  %v1846_v19 = vpop.f32.mrb[17].mxu1 }
 0x51a   : > { %v1412_v21 = vpop.f32.mrb[18].mxu1 }
 0x51b   : > { %v1420_v22 = vmul.f32 %v1418_v20, %v1410_v18  ;;  %v1847_v23 = vpop.f32.mrb[19].mxu1 }
 0x51d   : > { %v1421_v24 = vadd.f32 %v1420_v22, %v2337_v30 }
 0x51f   : > { %1422 = vst [vmem:[%s299_s23] sm:$0xff] %v1421_v24 }
 0x520   : > { %2022 = shalt.err (!%p2019_p7)
}
 0x521   : > { %s2023_s18 = scalar_lea.hbm %s2358_s14, 128  ;;  %s2027_s21 = scalar_lea.hbm %s2407_s7, 256 }
 0x522   : > { %p2024_p8 = scmp.ne.s32.totalorder %s2358_s14, %s2023_s18  ;;  %p2028_p1 = scmp.lt.u32.totalorder %s2358_s14, %s2407_s7 }
 0x523   : > { %p2029_p0 = scmp.lt.u32.totalorder %s2027_s21, %s2023_s18  ;;  %p2031_p6 = scmp.lt.u32.totalorder %s2023_s18, %s2358_s14 }
 0x524   : > { %p2025_p11 = pnand %p2024_p8, %p2418_p9 }
 0x525   : > { %p2030_p5 = por %p2029_p0, %p2028_p1 }
 0x526   : > { %p2026_p13 = pneg %p2025_p11 }
 0x527   : > { %p2032_p10 = por %p2031_p6, %p2030_p5 }
 0x529   : > { %p2033_p12 = pnand %p2032_p10, %p2026_p13 }
 0x52b   : > { %2036 = shalt.err (!%p2033_p12)
}
 0x52c   : > { %1853 = dma.vmem_to_hbm [thread:$0]  (%p2418_p9), %s2360_s29, 128, %s2358_s14, %s1424_s17  }
 0x52d PF: > { %p1865_p2 = scmp.ge.s32.totalorder %s2075_s27, 2  ;;  %s1449_s8 = sand.u32 1, %s2063_s24  }
 0x52e   : > { %p2419_p3 = scmp.ne.s32.totalorder %s2412_s12, 0  ;;  %s1450_s9 = scalar_lea.sflag [#allocation4], %s1449_s8 }
 0x530   : > { %p1860_p4 = pnand %p1865_p2, %p2419_p3 }
 0x532   : > { %2058 = dma.done.wait (!%p1860_p4), %s1450_s9, 128  }
 0x533   : > { %2060 = vsyncadd (!%p1860_p4), %s1450_s9, 4294967168  ;;  %p18_p7 = scmp.ge.s32.totalorder %s2149_s30, 4   ;;  %s2420_s24 = smov %s2067_s25 }
 0x534   : > { %s2421_s25 = smov %s2071_s26  ;;  %s2422_s26 = smov %s2160_s10 }
 0x535   : > { %s2423_s27 = smov %s2149_s30  ;;  %20 = sbr.rel (!%p18_p7) target bundleno = 4 (0x4), region = 98 }
 0x53c   :  { %1455 = vsyncpa [#allocation3], 1 }
 0x53d   :  { %1457 = vsyncpa [#allocation3 + $0x1], 1 }
 0x53e   :  { %1458 = vsyncpa [#allocation4], 1 }
 0x53f   :  { %1460 = vsyncpa [#allocation4 + $0x1], 1 }

// kernel: tpu_custom_call.1
= control target key start
LH: loop header
LB: loop body
LE: loop exit
PB: predicated region body
PF: predicated region fallthrough
CT: control target
= control target key end

     0   :  { %12 = vsyncpa [#allocation3], 0  ;;  %s2400_s0 = inlined_call_operand.vmem [shape: f32[2,8,128], index: 0, kind: input, shape index: {}]   ;;  %s2401_s1 = inlined_call_operand.vmem [shape: f32[2,48,1], index: 1, kind: input, shape index: {}]   ;;  %s2402_s2 = inlined_call_operand.hbm [shape: bf16[8,128,128], index: 2, kind: input, shape index: {}]   ;;  %s2403_s3 = inlined_call_operand.vmem [shape: bf16[16,8], index: 3, kind: input, shape index: {}]   ;;  %s2404_s4 = inlined_call_operand.vmem [shape: f32[16,1], index: 4, kind: input, shape index: {}]   ;;  %s2405_s5 = inlined_call_operand.vmem [shape: bf16[8,16], index: 5, kind: input, shape index: {}]   ;;  %s2406_s6 = inlined_call_operand.vmem [shape: f32[8,1], index: 6, kind: input, shape index: {}]   ;;  %s2407_s7 = inlined_call_operand.hbm [shape: f32[2,8,128], index: 7, kind: output, shape index: {}]  }
   0x1   :  { %13 = vsyncpa [#allocation4], 0 }
   0x2   :  { %15 = vsyncpa [#allocation4 + $0x1], 0  ;;  %s2124_s24 = smov 0   ;;  %s2126_s25 = smov 0  }
   0x3   :  { %s2128_s26 = smov 0   ;;  %s2130_s27 = smov 0  }
   0x4 LB: > { %s2145_s28 = sadd.s32 4294967295, %s2075_s27   ;;  %s1520_s29 = sadd.s32 4294967294, %s2075_s27   ;;  %s2075_s27 = sphi %s2130_s27, %s2423_s27   ;;  %s2071_s26 = sphi %s2128_s26, %s2422_s26   ;;  %s2067_s25 = sphi %s2126_s25, %s2421_s25   ;;  %s2063_s24 = sphi %s2124_s24, %s2420_s24  }
   0x5   : > { %s2149_s30 = sadd.s32 1, %s2075_s27   ;;  %s185_s8 = sadd.s32 1, %s2071_s26 }
   0x6   : > { %s182_s9 = ssub.s32 %s2075_s27, %s2149_s30  ;;  %p195_p0 = scmp.ne.s32.totalorder %s2071_s26, %s2067_s25 }
   0x7   : > { %p183_p1 = scmp.eq.s32.totalorder %s182_s9, 0  ;;  %p196_p2 = scmp.eq.s32.totalorder %s2145_s28, 1 }
   0x8   : > { %p201_p3 = scmp.ne.s32.totalorder %s2067_s25, %s2063_s24  ;;  %p202_p4 = scmp.eq.s32.totalorder %s1520_s29, 1 }
   0x9   : > { %s2160_s10 = scalar_select %p183_p1, %s2071_s26, %s185_s8  }
   0xa   : > { %p2162_p5 = por %p196_p2, %p195_p0  ;;  %p2166_p6 = por %p202_p4, %p201_p3 }
   0xb   : > { %p1521_p7 = scmp.ge.s32.totalorder %s2075_s27, 1  ;;  %p209_p8 = scmp.lt.s32.totalorder %s2075_s27, 3 }
   0xc   : > { %s2411_s11 = scalar_select %p2162_p5, 1, 0 }
   0xd   : > { %s2412_s12 = scalar_select %p2166_p6, 1, 0 }
   0xe   : > { %p2408_p9 = scmp.eq.s32.totalorder %s2145_s28, 0  ;;  %p2173_p10 = pnand %p1521_p7, %p209_p8 }
   0xf   : > { %s2077_s14 = smov [#allocation2]   ;;  %s1981_s19 = scalar_lea.hbm %s2402_s2, 8192 }
  0x10   : > { %s2413_s13 = scalar_select %p2173_p10, 1, 0 }
  0x11   : > { %s221_s15 = sshll.u32 %s2077_s14, 4  ;;  %p1855_p11 = pneg %p2173_p10  ;;  %s222_s15 = int_to_ptr.vmem [resolvable:$true] %s221_s15 }
  0x12   : > { %p1982_p13 = scmp.ne.s32.totalorder %s2402_s2, %s1981_s19  ;;  %p1988_p3 = scmp.lt.u32.totalorder %s1981_s19, %s2402_s2 }
  0x13   : > { %p2181_p12 = pnand %p2408_p9, %p1855_p11 }
  0x15   : > { %p1983_p0 = pneg %p2181_p12 }
  0x17   : > { %p1984_p1 = pnand %p1983_p0, %p1982_p13 }
  0x19   : > { %p1985_p2 = pneg %p1984_p1 }
  0x1b   : > { %p1990_p4 = pnand %p1988_p3, %p1985_p2 }
  0x1d   : > { %1993 = shalt.err (!%p1990_p4)
}
  0x1e   : > { %s1994_s29 = scalar_lea.vmem %s222_s15, 8192  ;;  %p2002_p9 = scmp.lt.s32.totalorder %s222_s15, %s222_s15 }
  0x1f   : > { %p1995_p7 = scmp.ne.s32.totalorder %s222_s15, %s1994_s29  ;;  %p2003_p6 = scmp.lt.s32.totalorder %s1994_s29, %s1994_s29 }
  0x21   : > { %p1997_p8 = pnand %p1995_p7, %p1983_p0  ;;  %p2004_p5 = por %p2003_p6, %p2002_p9 }
  0x23   : > { %p1998_p11 = pneg %p1997_p8 }
  0x25   : > { %p2005_p10 = pnand %p2004_p5, %p1998_p11 }
  0x27   : > { %2008 = shalt.err (!%p2005_p10)
}
  0x28   : > { %s2078_s8 = smov 64   ;;  %s2079_s9 = smov 4  }
  0x29   : > { %1858 = dma.hbm_to_vmem [thread:$0]  (!%p2181_p12), %s2402_s2, 8192, %s222_s15, [#allocation3], %s2078_s8, %s2078_s8, %s2079_s9  }
  0x2a   : > { %p2415_p13 = scmp.ne.s32.totalorder %s2413_s13, 0 }
  0x2b   : > { %p2416_p1 = scmp.eq.s32.totalorder (!%p2415_p13), %s2145_s28, 0 }
  0x2c   : > { %264 = sbr.rel (%p2415_p13) target bundleno = 1325 (0x52d), region = 48 }
  0x33   : > { %2054 = dma.done.wait (%p2416_p1), [#allocation3], 8192   ;;  %p2417_p0 = pmov %p2416_p1 }
  0x34   : > { %p300_p5 = scmp.lt.s32.totalorder %s2145_s28, 1  ;;  %v2080_v0 = vmov 0   ;;  %v2081_v1 = vmov 0.0   ;;  %v1906_v6 = vld [vmem:[#allocation2] sm:$0xff]   ;;  %v1908_v9 = vld [vmem:[#allocation2 + $0x8] sm:$0xff]   ;;  %v1910_v11 = vld [vmem:[#allocation2 + $0x10] sm:$0xff]  }
  0x35   : > { %2056 = vsyncadd (%p2417_p0), [#allocation3], 4294959104  ;;  %1904 = vset.pattern.permute.xlu1 %v2080_v0  ;;  %1676 = vmatprep.subr.bf16.mxu0 %v2081_v1  ;;  %v1907_v7 = vld [vmem:[#allocation2 + $0x40] sm:$0xff]   ;;  %v1909_v10 = vld [vmem:[#allocation2 + $0x48] sm:$0xff]   ;;  %vm2082_vm0 = vmmov 0   ;;  %vm1221_vm1 = vcmask 1040384  }
  0x36   : > { %s301_s16 = scalar_select %p300_p5, %s2145_s28, 1  ;;  %1696 = vmatprep.subr.bf16.mxu1 %v2081_v1  ;;  %1905 = vset.pattern.permute.xlu0 %v2080_v0  ;;  %v1911_v12 = vld [vmem:[#allocation2 + $0x50] sm:$0xff]   ;;  %v1912_v13 = vld [vmem:[#allocation2 + $0x18] sm:$0xff]   ;;  %v1914_v15 = vld [vmem:[#allocation2 + $0x20] sm:$0xff]   ;;  %vm1223_vm2 = vcmask 1041408   ;;  %vm1225_vm3 = vcmask 1042432  }
  0x37   : > { %1677 = vmatpush3.bf16.xpose.msra.mxu0 %v1906_v6  ;;  %1697 = vmatpush3.bf16.xpose.msra.mxu1 %v1907_v7  ;;  %v1913_v14 = vld [vmem:[#allocation2 + $0x58] sm:$0xff]   ;;  %v1915_v16 = vld [vmem:[#allocation2 + $0x60] sm:$0xff]   ;;  %v1916_v17 = vld [vmem:[#allocation2 + $0x28] sm:$0xff]   ;;  %vm1227_vm4 = vcmask 1043456   ;;  %vm1229_vm5 = vcmask 1044480   ;;  %vm1231_vm6 = vcmask 1045504  }
  0x38   : > { %s1527_s13 = sshll.u32 %s301_s16, 3  ;;  %s1848_s15 = smul.u32 48, %s301_s16  ;;  %1678 = vmatprep.subr.bf16.mxu0 %v2081_v1  ;;  %1698 = vmatprep.subr.bf16.mxu1 %v2081_v1  ;;  %v1917_v18 = vld [vmem:[#allocation2 + $0x68] sm:$0xff]   ;;  %v1918_v19 = vld [vmem:[#allocation2 + $0x30] sm:$0xff]   ;;  %v1920_v21 = vld [vmem:[#allocation2 + $0x38] sm:$0xff]   ;;  %vm1233_vm7 = vcmask 1046528  }
  0x39   : > { %s303_s20 = scalar_lea.vmem %s2400_s0, %s1527_s13  ;;  %1692 = vmatprep.mubr.msk.bf16.mxu0 %vm2082_vm0, %v2081_v1  ;;  %1712 = vmatprep.mubr.msk.bf16.mxu1 %vm2082_vm0, %v2081_v1  ;;  %v1919_v20 = vld [vmem:[#allocation2 + $0x70] sm:$0xff]   ;;  %v1921_v22 = vld [vmem:[#allocation2 + $0x78] sm:$0xff]   ;;  %v1922_v37 = vld [vmem:[#allocation2 + $0x80] sm:$0xff]   ;;  %vm1297_vm8 = vcmask 64512   ;;  %vm1371_vm9 = vcmask 130048   ;;  %s1597_s22 = sshll.u32 %s2145_s28, 7 }
  0x3a   : > { %s2217_s23 = scalar_lea.vmem %s2401_s1, %s1848_s15  ;;  %v2219_v2 = vld [vmem:[%s303_s20] sm:$0xff]  ;;  %v1924_v41 = vld [vmem:[#allocation2 + $0x88] sm:$0xff]   ;;  %v1926_v43 = vld [vmem:[#allocation2 + $0x90] sm:$0xff]   ;;  %s297_s20 = sand.u32 1, %s2067_s25  }
  0x3b   : > { %v312_v3 = vld [vmem:[%s2217_s23 + $0x8] sm:$0xff]  ;;  %317 = vadd.xlane.f32.xlu0 %v2219_v2  ;;  %v319_v4 = vmul.f32 %v2219_v2, %v2219_v2  ;;  %v311_v8 = vld [vmem:[%s2217_s23] sm:$0xff]  ;;  %v1927_v44 = vld [vmem:[#allocation2 + $0xd0] sm:$0xff]   ;;  %s1526_s21 = sshll.u32 %s297_s20, 3  ;;  %s2358_s14 = scalar_lea.hbm %s2407_s7, %s1597_s22 }
  0x3c   : > { %v330_v5 = vadd.f32 1.0, %v312_v3  ;;  %v1923_v39 = vld [vmem:[#allocation2 + $0xc0] sm:$0xff]   ;;  %v1925_v42 = vld [vmem:[#allocation2 + $0xc8] sm:$0xff]   ;;  %v1928_v45 = vld [vmem:[#allocation2 + $0x98] sm:$0xff]   ;;  %s1424_s17 = scalar_lea.sflag [#allocation4], %s297_s20  ;;  %p2418_p9 = scmp.ne.s32.totalorder %s2411_s11, 0 }
  0x3d   : > { %v1929_v46 = vld [vmem:[#allocation2 + $0xd8] sm:$0xff]   ;;  %v1930_v47 = vld [vmem:[#allocation2 + $0xa0] sm:$0xff]   ;;  %v1932_v49 = vld [vmem:[#allocation2 + $0xa8] sm:$0xff]   ;;  %s2083_s28 = smov [#allocation5]  }
  0x3e   : > { %333 = vperm.xlu1 %1904, %v330_v5   ;;  %v1931_v48 = vld [vmem:[#allocation2 + $0xe0] sm:$0xff]   ;;  %v1933_v50 = vld [vmem:[#allocation2 + $0xe8] sm:$0xff]   ;;  %v1934_v51 = vld [vmem:[#allocation2 + $0xb0] sm:$0xff]   ;;  %s2013_s13 = sshll.u32 %s2083_s28, 4  ;;  %s2014_s13 = int_to_ptr.vmem [resolvable:$false] %s2013_s13 }
  0x3f   : > { %320 = vadd.xlane.f32.xlu0 %v319_v4  ;;  %1679 = vmatpush3.bf16.xpose.msra.mxu0 %v1908_v9  ;;  %v1935_v52 = vld [vmem:[#allocation2 + $0xf0] sm:$0xff]   ;;  %v1936_v53 = vld [vmem:[#allocation2 + $0xb8] sm:$0xff]   ;;  %v1938_v55 = vld [vmem:[#allocation2 + $0x100] sm:$0xff]   ;;  %s2015_s15 = scalar_lea.vmem %s2014_s13, 256 }
  0x40   : > { %1699 = vmatpush3.bf16.xpose.msra.mxu1 %v1909_v10  ;;  %1680 = vmatprep.subr.bf16.mxu0 %v2081_v1  ;;  %v1937_v54 = vld [vmem:[#allocation2 + $0xf8] sm:$0xff]   ;;  %v1939_v57 = vld [vmem:[#allocation2 + $0x140] sm:$0xff]   ;;  %v1940_v59 = vld [vmem:[#allocation2 + $0x108] sm:$0xff]  }
  0x41   : > { %1700 = vmatprep.subr.bf16.mxu1 %v2081_v1  ;;  %v1941_v60 = vld [vmem:[#allocation2 + $0x148] sm:$0xff]   ;;  %v1942_v61 = vld [vmem:[#allocation2 + $0x110] sm:$0xff]   ;;  %v1944_v63 = vld [vmem:[#allocation2 + $0x118] sm:$0xff]  }
  0x42   : > { %339 = vperm.xlu1 %1904, %v311_v8   ;;  %v1943_v62 = vld [vmem:[#allocation2 + $0x150] sm:$0xff]   ;;  %v1945_v0 = vld [vmem:[#allocation2 + $0x158] sm:$0xff]   ;;  %v1946_v3 = vld [vmem:[#allocation2 + $0x120] sm:$0xff]  }
  0x43   : > { %v1947_v4 = vld [vmem:[#allocation2 + $0x160] sm:$0xff]   ;;  %v1948_v5 = vld [vmem:[#allocation2 + $0x128] sm:$0xff]   ;;  %v1950_v7 = vld [vmem:[#allocation2 + $0x130] sm:$0xff]  }
  0x44   : > { %v1949_v6 = vld [vmem:[#allocation2 + $0x168] sm:$0xff]   ;;  %v1951_v8 = vld [vmem:[#allocation2 + $0x170] sm:$0xff]   ;;  %v1952_v9 = vld [vmem:[#allocation2 + $0x138] sm:$0xff]  }
  0x45   : > { %v1953_v10 = vld [vmem:[#allocation2 + $0x178] sm:$0xff]  }
  0x47   : > { %1681 = vmatpush3.bf16.xpose.msra.mxu0 %v1910_v11  ;;  %v1954_v11 = vld [vmem:[#allocation2 + $0x180] sm:$0xff]  }
  0x48   : > { %1701 = vmatpush3.bf16.xpose.msra.mxu1 %v1911_v12  ;;  %1682 = vmatprep.subr.bf16.mxu0 %v2081_v1 }
  0x49   : > { %1702 = vmatprep.subr.bf16.mxu1 %v2081_v1 }
  0x4f   : > { %1683 = vmatpush3.bf16.xpose.msra.mxu0 %v1912_v13  ;;  %v1955_v13 = vld [vmem:[#allocation2 + $0x1c0] sm:$0xff]  }
  0x50   : > { %1703 = vmatpush3.bf16.xpose.msra.mxu1 %v1913_v14  ;;  %1684 = vmatprep.subr.bf16.mxu0 %v2081_v1 }
  0x51   : > { %1704 = vmatprep.subr.bf16.mxu1 %v2081_v1 }
  0x57   : > { %1685 = vmatpush3.bf16.xpose.msra.mxu0 %v1914_v15  ;;  %v1956_v15 = vld [vmem:[#allocation2 + $0x188] sm:$0xff]  }
  0x58   : > { %1705 = vmatpush3.bf16.xpose.msra.mxu1 %v1915_v16  ;;  %1686 = vmatprep.subr.bf16.mxu0 %v2081_v1  ;;  %v1957_v16 = vld [vmem:[#allocation2 + $0x1c8] sm:$0xff]  }
  0x59   : > { %1706 = vmatprep.subr.bf16.mxu1 %v2081_v1 }
  0x5f   : > { %1687 = vmatpush3.bf16.xpose.msra.mxu0 %v1916_v17  ;;  %v1958_v17 = vld [vmem:[#allocation2 + $0x190] sm:$0xff]  }
  0x60   : > { %1707 = vmatpush3.bf16.xpose.msra.mxu1 %v1917_v18  ;;  %1688 = vmatprep.subr.bf16.mxu0 %v2081_v1  ;;  %v1959_v18 = vld [vmem:[#allocation2 + $0x1d0] sm:$0xff]  }
  0x61   : > { %1708 = vmatprep.subr.bf16.mxu1 %v2081_v1 }
  0x67   : > { %1689 = vmatpush3.bf16.xpose.msra.mxu0 %v1918_v19  ;;  %v1960_v19 = vld [vmem:[#allocation2 + $0x198] sm:$0xff]  }
  0x68   : > { %1709 = vmatpush3.bf16.xpose.msra.mxu1 %v1919_v20  ;;  %1690 = vmatprep.subr.bf16.mxu0 %v2081_v1  ;;  %v1961_v20 = vld [vmem:[#allocation2 + $0x1d8] sm:$0xff]  }
  0x69   : > { %1710 = vmatprep.subr.bf16.mxu1 %v2081_v1 }
  0x6f   : > { %1691 = vmatpush3.bf16.xpose.msra.mxu0 %v1920_v21  ;;  %v313_v21 = vld [vmem:[%s2217_s23 + $0x10] sm:$0xff] }
  0x70   : > { %1711 = vmatpush3.bf16.xpose.msra.mxu1 %v1921_v22  ;;  %1716 = vmatprep.subr.bf16.mxu0 %v2081_v1  ;;  %v314_v22 = vld [vmem:[%s2217_s23 + $0x18] sm:$0xff] }
  0x71   : > { %1736 = vmatprep.subr.bf16.mxu1 %v2081_v1  ;;  %1246 = vperm.xlu0 %1905, %v313_v21  }
  0x75   : > { %1273 = vperm.xlu0 %1905, %v314_v22  }
  0xbd   : > { %v334_v30 = vpop.permute.xlu1 %333 }
  0xc1   : > { %v340_v35 = vpop.permute.xlu1 %339 }
  0xc8   : > { %v318_v23 = vpop.xlane.xlu0 %317 }
  0xc9   : > { %v322_v24 = vmul.f32 0.0078125, %v318_v23  ;;  %v1962_v23 = vld [vmem:[#allocation2 + $0x1a0] sm:$0xff]  }
  0xcb   : > { %v324_v26 = vmul.f32 %v322_v24, %v322_v24  ;;  %v326_v31 = vsub.f32 %v2219_v2, %v322_v24  ;;  %v1280_v24 = vld [vmem:[%s2404_s4] sm:$0xff] }
  0xcc   : > { %v321_v25 = vpop.xlane.xlu0 %320  ;;  %1284 = vperm.xlu0 %1905, %v1280_v24  }
  0xcd   : > { %v323_v27 = vmul.f32 0.0078125, %v321_v25  ;;  %v1963_v25 = vld [vmem:[#allocation2 + $0x1e0] sm:$0xff]  }
  0xcf   : > { %v325_v28 = vsub.f32 %v323_v27, %v324_v26  ;;  %v1281_v26 = vld [vmem:[%s2404_s4 + $0x8] sm:$0xff] }
  0xd0   : > { %v1964_v27 = vld [vmem:[#allocation2 + $0x1a8] sm:$0xff]   ;;  %1289 = vperm.xlu0 %1905, %v1281_v26  }
  0xd1   : > { %v327_v29 = vadd.f32 1e-05, %v325_v28  ;;  %v1365_v28 = vld [vmem:[%s2406_s6] sm:$0xff] }
  0xd3   : > { %1971 = vrsqrt.f32 %v327_v29  ;;  %v1965_v29 = vld [vmem:[#allocation2 + $0x1e8] sm:$0xff]  }
  0xd4   : > { %1368 = vperm.xlu0 %1905, %v1365_v28  }
  0xdd   : > { %v1972_v32 = vpop.eup %1971 }
  0xde   : > { %v329_v33 = vmul.f32 %v1972_v32, %v326_v31  ;;  %v1967_v31 = vld [vmem:[#allocation2 + $0x1f0] sm:$0xff]   ;;  %v1968_v32 = vld [vmem:[#allocation2 + $0x1b8] sm:$0xff]  }
  0xe0   : > { %v336_v34 = vmul.f32 %v334_v30, %v329_v33  ;;  %v1966_v30 = vld [vmem:[#allocation2 + $0x1b0] sm:$0xff]   ;;  %v1969_v33 = vld [vmem:[#allocation2 + $0x1f8] sm:$0xff]  }
  0xe2   : > { %v342_v36 = vadd.f32 %v340_v35, %v336_v34 }
  0xe4   : > { %v2247_v38 = vpack.c.bf16 %v342_v36, %v342_v36 }
  0xe6   : > { %1693 = vmatmul.mubr.bf16.vlgmr.msra.gmra.mrb[0].mxu0 %v2247_v38  ;;  %v2251_v40 = vshrl.u32 %v2247_v38, 16  ;;  %v575_v56 = vrot.slane %v2247_v38, 1  ;;  %v789_v12 = vrot.slane %v2247_v38, 2  ;;  %v1003_v34 = vrot.slane %v2247_v38, 3 }
  0xe7   : > { %1717 = vmatpush3.bf16.xpose.msra.mxu0 %v1922_v37  ;;  %1732 = vmatprep.mubr.msk.bf16.mxu0 %vm2082_vm0, %v2081_v1 }
  0xe8   : > { %1713 = vmatmul.mubr.bf16.vlgmr.msra.gmra.mrb[0].mxu1 %v2251_v40  ;;  %1718 = vmatprep.subr.bf16.mxu0 %v2081_v1  ;;  %v682_v58 = vrot.slane %v2251_v40, 1  ;;  %v896_v14 = vrot.slane %v2251_v40, 2  ;;  %v1110_v35 = vrot.slane %v2251_v40, 3 }
  0xe9   : > { %1737 = vmatpush3.bf16.xpose.msra.mxu1 %v1923_v39  ;;  %1752 = vmatprep.mubr.msk.bf16.mxu1 %vm2082_vm0, %v2081_v1 }
  0xea   : > { %1738 = vmatprep.subr.bf16.mxu1 %v2081_v1 }
  0xef   : > { %1719 = vmatpush3.bf16.xpose.msra.mxu0 %v1924_v41 }
  0xf0   : > { %1720 = vmatprep.subr.bf16.mxu0 %v2081_v1  ;;  %v1247_v28 = vpop.permute.xlu0 %1246 }
  0xf1   : > { %1739 = vmatpush3.bf16.xpose.msra.mxu1 %v1925_v42 }
  0xf2   : > { %1740 = vmatprep.subr.bf16.mxu1 %v2081_v1 }
  0xf7   : > { %1721 = vmatpush3.bf16.xpose.msra.mxu0 %v1926_v43 }
  0xf8   : > { %1722 = vmatprep.subr.bf16.mxu0 %v2081_v1 }
  0xf9   : > { %1741 = vmatpush3.bf16.xpose.msra.mxu1 %v1927_v44 }
  0xfa   : > { %1742 = vmatprep.subr.bf16.mxu1 %v2081_v1 }
  0xff   : > { %1723 = vmatpush3.bf16.xpose.msra.mxu0 %v1928_v45 }
 0x100   : > { %1724 = vmatprep.subr.bf16.mxu0 %v2081_v1 }
 0x101   : > { %1743 = vmatpush3.bf16.xpose.msra.mxu1 %v1929_v46 }
 0x102   : > { %1744 = vmatprep.subr.bf16.mxu1 %v2081_v1 }
 0x107   : > { %1725 = vmatpush3.bf16.xpose.msra.mxu0 %v1930_v47 }
 0x108   : > { %1726 = vmatprep.subr.bf16.mxu0 %v2081_v1 }
 0x109   : > { %1745 = vmatpush3.bf16.xpose.msra.mxu1 %v1931_v48 }
 0x10a   : > { %1746 = vmatprep.subr.bf16.mxu1 %v2081_v1 }
 0x10f   : > { %1727 = vmatpush3.bf16.xpose.msra.mxu0 %v1932_v49 }
 0x110   : > { %1728 = vmatprep.subr.bf16.mxu0 %v2081_v1 }
 0x111   : > { %1747 = vmatpush3.bf16.xpose.msra.mxu1 %v1933_v50 }
 0x112   : > { %1748 = vmatprep.subr.bf16.mxu1 %v2081_v1 }
 0x117   : > { %1729 = vmatpush3.bf16.xpose.msra.mxu0 %v1934_v51 }
 0x118   : > { %1730 = vmatprep.subr.bf16.mxu0 %v2081_v1 }
 0x119   : > { %1749 = vmatpush3.bf16.xpose.msra.mxu1 %v1935_v52 }
 0x11a   : > { %1750 = vmatprep.subr.bf16.mxu1 %v2081_v1 }
 0x11f   : > { %1731 = vmatpush3.bf16.xpose.msra.mxu0 %v1936_v53 }
 0x120   : > { %1756 = vmatprep.subr.bf16.mxu0 %v2081_v1 }
 0x121   : > { %1751 = vmatpush3.bf16.xpose.msra.mxu1 %v1937_v54 }
 0x122   : > { %1776 = vmatprep.subr.bf16.mxu1 %v2081_v1 }
 0x126   : > { %1733 = vmatmul.mubr.bf16.vlgmr.msra.gmra.mrb[4].mxu0 %v575_v56 }
 0x127   : > { %1757 = vmatpush3.bf16.xpose.msra.mxu0 %v1938_v55  ;;  %1772 = vmatprep.mubr.msk.bf16.mxu0 %vm2082_vm0, %v2081_v1 }
 0x128   : > { %1753 = vmatmul.mubr.bf16.vlgmr.msra.gmra.mrb[4].mxu1 %v682_v58  ;;  %1758 = vmatprep.subr.bf16.mxu0 %v2081_v1 }
 0x129   : > { %1777 = vmatpush3.bf16.xpose.msra.mxu1 %v1939_v57  ;;  %1792 = vmatprep.mubr.msk.bf16.mxu1 %vm2082_vm0, %v2081_v1 }
 0x12a   : > { %1778 = vmatprep.subr.bf16.mxu1 %v2081_v1 }
 0x12f   : > { %1759 = vmatpush3.bf16.xpose.msra.mxu0 %v1940_v59 }
 0x130   : > { %1760 = vmatprep.subr.bf16.mxu0 %v2081_v1 }
 0x131   : > { %1779 = vmatpush3.bf16.xpose.msra.mxu1 %v1941_v60 }
 0x132   : > { %1780 = vmatprep.subr.bf16.mxu1 %v2081_v1 }
 0x137   : > { %1761 = vmatpush3.bf16.xpose.msra.mxu0 %v1942_v61 }
 0x138   : > { %1762 = vmatprep.subr.bf16.mxu0 %v2081_v1 }
 0x139   : > { %1781 = vmatpush3.bf16.xpose.msra.mxu1 %v1943_v62 }
 0x13a   : > { %1782 = vmatprep.subr.bf16.mxu1 %v2081_v1 }
 0x13f   : > { %1763 = vmatpush3.bf16.xpose.msra.mxu0 %v1944_v63 }
 0x140   : > { %1764 = vmatprep.subr.bf16.mxu0 %v2081_v1 }
 0x141   : > { %1783 = vmatpush3.bf16.xpose.msra.mxu1 %v1945_v0 }
 0x142   : > { %1784 = vmatprep.subr.bf16.mxu1 %v2081_v1 }
 0x147   : > { %1765 = vmatpush3.bf16.xpose.msra.mxu0 %v1946_v3 }
 0x148   : > { %1766 = vmatprep.subr.bf16.mxu0 %v2081_v1 }
 0x149   : > { %1785 = vmatpush3.bf16.xpose.msra.mxu1 %v1947_v4 }
 0x14a   : > { %1786 = vmatprep.subr.bf16.mxu1 %v2081_v1 }
 0x14f   : > { %1767 = vmatpush3.bf16.xpose.msra.mxu0 %v1948_v5 }
 0x150   : > { %1768 = vmatprep.subr.bf16.mxu0 %v2081_v1 }
 0x151   : > { %1787 = vmatpush3.bf16.xpose.msra.mxu1 %v1949_v6 }
 0x152   : > { %1788 = vmatprep.subr.bf16.mxu1 %v2081_v1 }
 0x157   : > { %1769 = vmatpush3.bf16.xpose.msra.mxu0 %v1950_v7 }
 0x158   : > { %1770 = vmatprep.subr.bf16.mxu0 %v2081_v1 }
 0x159   : > { %1789 = vmatpush3.bf16.xpose.msra.mxu1 %v1951_v8 }
 0x15a   : > { %1790 = vmatprep.subr.bf16.mxu1 %v2081_v1 }
 0x15f   : > { %1771 = vmatpush3.bf16.xpose.msra.mxu0 %v1952_v9 }
 0x160   : > { %1796 = vmatprep.subr.bf16.mxu0 %v2081_v1 }
 0x161   : > { %1791 = vmatpush3.bf16.xpose.msra.mxu1 %v1953_v10 }
 0x162   : > { %1816 = vmatprep.subr.bf16.mxu1 %v2081_v1 }
 0x166   : > { %1773 = vmatmul.mubr.bf16.vlgmr.msra.gmra.mrb[8].mxu0 %v789_v12 }
 0x167   : > { %1797 = vmatpush3.bf16.xpose.msra.mxu0 %v1954_v11  ;;  %1812 = vmatprep.mubr.msk.bf16.mxu0 %vm2082_vm0, %v2081_v1 }
 0x168   : > { %1793 = vmatmul.mubr.bf16.vlgmr.msra.gmra.mrb[8].mxu1 %v896_v14  ;;  %1798 = vmatprep.subr.bf16.mxu0 %v2081_v1 }
 0x169   : > { %1817 = vmatpush3.bf16.xpose.msra.mxu1 %v1955_v13  ;;  %1832 = vmatprep.mubr.msk.bf16.mxu1 %vm2082_vm0, %v2081_v1 }
 0x16a   : > { %1818 = vmatprep.subr.bf16.mxu1 %v2081_v1 }
 0x16f   : > { %1799 = vmatpush3.bf16.xpose.msra.mxu0 %v1956_v15 }
 0x170   : > { %1800 = vmatprep.subr.bf16.mxu0 %v2081_v1 }
 0x171   : > { %1819 = vmatpush3.bf16.xpose.msra.mxu1 %v1957_v16 }
 0x172   : > { %1820 = vmatprep.subr.bf16.mxu1 %v2081_v1 }
 0x177   : > { %1801 = vmatpush3.bf16.xpose.msra.mxu0 %v1958_v17 }
 0x178   : > { %1802 = vmatprep.subr.bf16.mxu0 %v2081_v1 }
 0x179   : > { %1821 = vmatpush3.bf16.xpose.msra.mxu1 %v1959_v18 }
 0x17a   : > { %1822 = vmatprep.subr.bf16.mxu1 %v2081_v1 }
 0x17f   : > { %1803 = vmatpush3.bf16.xpose.msra.mxu0 %v1960_v19 }
 0x180   : > { %1804 = vmatprep.subr.bf16.mxu0 %v2081_v1 }
 0x181   : > { %1823 = vmatpush3.bf16.xpose.msra.mxu1 %v1961_v20 }
 0x182   : > { %1824 = vmatprep.subr.bf16.mxu1 %v2081_v1 }
 0x187   : > { %1805 = vmatpush3.bf16.xpose.msra.mxu0 %v1962_v23 }
 0x188   : > { %1806 = vmatprep.subr.bf16.mxu0 %v2081_v1 }
 0x189   : > { %1825 = vmatpush3.bf16.xpose.msra.mxu1 %v1963_v25 }
 0x18a   : > { %1826 = vmatprep.subr.bf16.mxu1 %v2081_v1 }
 0x18f   : > { %1807 = vmatpush3.bf16.xpose.msra.mxu0 %v1964_v27 }
 0x190   : > { %1808 = vmatprep.subr.bf16.mxu0 %v2081_v1 }
 0x191   : > { %1827 = vmatpush3.bf16.xpose.msra.mxu1 %v1965_v29 }
 0x192   : > { %1828 = vmatprep.subr.bf16.mxu1 %v2081_v1 }
 0x197   : > { %1809 = vmatpush3.bf16.xpose.msra.mxu0 %v1966_v30 }
 0x198   : > { %1810 = vmatprep.subr.bf16.mxu0 %v2081_v1 }
 0x199   : > { %1829 = vmatpush3.bf16.xpose.msra.mxu1 %v1967_v31 }
 0x19a   : > { %1830 = vmatprep.subr.bf16.mxu1 %v2081_v1 }
 0x19f   : > { %1811 = vmatpush3.bf16.xpose.msra.mxu0 %v1968_v32  ;;  %v315_v32 = vld [vmem:[%s2217_s23 + $0x20] sm:$0xff] }
 0x1a0   : > { %1836 = vmatprep.subr.bf16.mxu0 %v2081_v1 }
 0x1a1   : > { %1831 = vmatpush3.bf16.xpose.msra.mxu1 %v1969_v33  ;;  %v1264_v33 = vadd.f32 1.0, %v315_v32 }
 0x1a2   : > { %1842 = vmatprep.subr.bf16.mxu1 %v2081_v1 }
 0x1a6   : > { %1813 = vmatmul.mubr.bf16.vlgmr.msra.gmra.mrb[12].mxu0 %v1003_v34  ;;  %v316_v34 = vld [vmem:[%s2217_s23 + $0x28] sm:$0xff]  ;;  %s299_s23 = scalar_lea.vmem [#allocation5], %s1526_s21 }
 0x1a7   : > { %1838 = vmatprep.mubr.msk.bf16.mxu0 %vm2082_vm0, %v2081_v1  ;;  %s1437_s29 = sshll.u32 %s299_s23, 4  ;;  %s2360_s29 = int_to_ptr.vmem [resolvable:$true] %s1437_s29 }
 0x1a8   : > { %1833 = vmatmul.mubr.bf16.vlgmr.msra.gmra.mrb[12].mxu1 %v1110_v35  ;;  %s2009_s16 = scalar_lea.vmem %s2360_s29, 128  ;;  %p2016_p2 = scmp.lt.s32.totalorder %s2360_s29, %s2014_s13 }
 0x1a9   : > { %1844 = vmatprep.mubr.msk.bf16.mxu1 %vm2082_vm0, %v2081_v1  ;;  %p2010_p6 = scmp.ne.s32.totalorder %s2360_s29, %s2009_s16  ;;  %p2017_p3 = scmp.lt.s32.totalorder %s2015_s15, %s2009_s16 }
 0x1ab   : > { %p2011_p10 = pnand %p2010_p6, %p2418_p9  ;;  %p2018_p4 = por %p2017_p3, %p2016_p2 }
 0x1ad   : > { %p2012_p12 = pneg %p2011_p10 }
 0x1af   : > { %p2019_p7 = pnand %p2018_p4, %p2012_p12 }
 0x1b9   : > { %v442_v36 = vpop.f32.mrb[0].mxu0 }
 0x1ba   : > { %v1694_v37 = vpop.f32.mrb[1].mxu0 }
 0x1bb   : > { %v445_v39 = vpop.f32.mrb[2].mxu0  ;;  %v551_v41 = vpop.f32.mrb[0].mxu1 }
 0x1bc   : > { %v1201_v42 = vrot.slane %v551_v41, 7  ;;  %v1695_v43 = vpop.f32.mrb[3].mxu0  ;;  %v1714_v44 = vpop.f32.mrb[1].mxu1 }
 0x1bd   : > { %v554_v45 = vpop.f32.mrb[2].mxu1 }
 0x1be   : > { %v1222_v38 = vsel %vm1221_vm1, %v442_v36, %v1201_v42  ;;  %v1715_v46 = vpop.f32.mrb[3].mxu1 }
 0x1f9   : > { %v659_v47 = vpop.f32.mrb[4].mxu0 }
 0x1fa   : > { %v1204_v40 = vrot.slane %v659_v47, 6  ;;  %v1734_v48 = vpop.f32.mrb[5].mxu0  ;;  %v1274_v47 = vpop.permute.xlu0 %1273 }
 0x1fb   : > { %v662_v49 = vpop.f32.mrb[6].mxu0  ;;  %v766_v50 = vpop.f32.mrb[4].mxu1 }
 0x1fc   : > { %v1224_v51 = vsel %vm1223_vm2, %v1222_v38, %v1204_v40  ;;  %v1207_v1 = vrot.slane %v766_v50, 5  ;;  %v1735_v52 = vpop.f32.mrb[7].mxu0  ;;  %v1754_v53 = vpop.f32.mrb[5].mxu1  ;;  %v1970_v50 = vld [vmem:[%s2403_s3] sm:$0xff]  }
 0x1fd   : > { %v769_v54 = vpop.f32.mrb[6].mxu1 }
 0x1fe   : > { %v1226_v55 = vsel %vm1225_vm3, %v1224_v51, %v1207_v1  ;;  %v1755_v56 = vpop.f32.mrb[7].mxu1  ;;  %v1285_v51 = vpop.permute.xlu0 %1284 }
 0x202   : > { %v1290_v54 = vpop.permute.xlu0 %1289 }
 0x239   : > { %v873_v57 = vpop.f32.mrb[8].mxu0 }
 0x23a   : > { %v1210_v58 = vrot.slane %v873_v57, 4  ;;  %v1774_v59 = vpop.f32.mrb[9].mxu0 }
 0x23b   : > { %v876_v60 = vpop.f32.mrb[10].mxu0  ;;  %v980_v61 = vpop.f32.mrb[8].mxu1 }
 0x23c   : > { %v1228_v62 = vsel %vm1227_vm4, %v1226_v55, %v1210_v58  ;;  %v1213_v63 = vrot.slane %v980_v61, 3  ;;  %v1775_v0 = vpop.f32.mrb[11].mxu0  ;;  %v1794_v3 = vpop.f32.mrb[9].mxu1 }
 0x23d   : > { %v983_v4 = vpop.f32.mrb[10].mxu1 }
 0x23e   : > { %v1230_v5 = vsel %vm1229_vm5, %v1228_v62, %v1213_v63  ;;  %v1795_v6 = vpop.f32.mrb[11].mxu1 }
 0x279   : > { %v1087_v7 = vpop.f32.mrb[12].mxu0 }
 0x27a   : > { %v1216_v8 = vrot.slane %v1087_v7, 2  ;;  %v1814_v9 = vpop.f32.mrb[13].mxu0 }
 0x27b   : > { %v1090_v10 = vpop.f32.mrb[14].mxu0  ;;  %v1194_v11 = vpop.f32.mrb[12].mxu1 }
 0x27c   : > { %v1232_v12 = vsel %vm1231_vm6, %v1230_v5, %v1216_v8  ;;  %v1219_v13 = vrot.slane %v1194_v11, 1  ;;  %v1815_v14 = vpop.f32.mrb[15].mxu0  ;;  %v1834_v15 = vpop.f32.mrb[13].mxu1 }
 0x27d   : > { %v1197_v16 = vpop.f32.mrb[14].mxu1  ;;  %v1363_v15 = vld [vmem:[%s2405_s5] sm:$0xf] }
 0x27e   : > { %v1234_v17 = vsel %vm1233_vm7, %v1232_v12, %v1219_v13  ;;  %v1835_v18 = vpop.f32.mrb[15].mxu1  ;;  %v1369_v16 = vpop.permute.xlu0 %1368 }
 0x27f   : > { %v1235_v19 = vmul.f32 %v1234_v17, %v1234_v17 }
 0x281   : > { %v1236_v20 = vmul.f32 %v1235_v19, %v1234_v17 }
 0x283   : > { %v1237_v21 = vmul.f32 0.044715, %v1236_v20 }
 0x285   : > { %v1238_v22 = vadd.f32 %v1237_v21, %v1234_v17 }
 0x287   : > { %v1239_v23 = vmul.f32 0.7978846, %v1238_v22 }
 0x289   : > { %1973 = vtanh.f32 %v1239_v23 }
 0x293   : > { %v1974_v24 = vpop.eup %1973 }
 0x294   : > { %v1241_v25 = vadd.f32 1.0, %v1974_v24 }
 0x296   : > { %v1242_v26 = vmul.f32 0.5, %v1241_v25 }
 0x298   : > { %v1243_v27 = vmul.f32 %v1242_v26, %v1234_v17 }
 0x29a   : > { %v1249_v29 = vmul.f32 %v1247_v28, %v1243_v27 }
 0x29c   : > { %v2337_v30 = vadd.f32 %v1249_v29, %v2219_v2 }
 0x29e   : > { %1251 = vadd.xlane.f32.xlu1 %v2337_v30  ;;  %v1253_v31 = vmul.f32 %v2337_v30, %v2337_v30 }
 0x2a2   : > { %1254 = vadd.xlane.f32.xlu1 %v1253_v31 }
 0x2b3   : > { %1267 = vperm.xlu1 %1904, %v1264_v33  }
 0x2b7   : > { %1417 = vperm.xlu1 %1904, %v316_v34  }
 0x32b   : > { %v1252_v35 = vpop.xlane.xlu1 %1251 }
 0x32c   : > { %v1256_v36 = vmul.f32 0.0078125, %v1252_v35 }
 0x32e   : > { %v1258_v39 = vmul.f32 %v1256_v36, %v1256_v36  ;;  %v1260_v2 = vsub.f32 %v2337_v30, %v1256_v36 }
 0x32f   : > { %v1255_v37 = vpop.xlane.xlu1 %1254 }
 0x330   : > { %v1257_v41 = vmul.f32 0.0078125, %v1255_v37 }
 0x332   : > { %v1259_v42 = vsub.f32 %v1257_v41, %v1258_v39 }
 0x333   : > { %v1268_v38 = vpop.permute.xlu1 %1267 }
 0x334   : > { %v1261_v43 = vadd.f32 1e-05, %v1259_v42 }
 0x336   : > { %1975 = vrsqrt.f32 %v1261_v43 }
 0x337   : > { %v1418_v20 = vpop.permute.xlu1 %1417 }
 0x340   : > { %v1976_v44 = vpop.eup %1975 }
 0x341   : > { %v1263_v45 = vmul.f32 %v1976_v44, %v1260_v2 }
 0x343   : > { %v1270_v46 = vmul.f32 %v1268_v38, %v1263_v45 }
 0x345   : > { %v1276_v40 = vadd.f32 %v1274_v47, %v1270_v46 }
 0x347   : > { %v1279_v48 = vpack.c.bf16 %v1276_v40, %v1276_v40 }
 0x349   : > { %v1302_v49 = vsel %vm1227_vm4, %v1279_v48, 0 }
 0x34a   : > { %1837 = vmatpush3.bf16.msra.mxu0 %v1302_v49 }
 0x34d   : > { %1839 = vmatmul.mubr.msk.bf16.vlgmr.msra.gmra.mrb[16].mxu0 %vm1297_vm8, %v1970_v50 }
 0x420   : > { %v1338_v1 = vpop.f32.mrb[16].mxu0 }
 0x421   : > { %v1339_v52 = vadd.f32 %v1338_v1, %v1285_v51  ;;  %v1840_v53 = vpop.f32.mrb[17].mxu0 }
 0x422   : > { %v1341_v55 = vpop.f32.mrb[18].mxu0 }
 0x423   : > { %v1345_v56 = vmul.f32 %v1339_v52, %v1339_v52  ;;  %v1342_v57 = vadd.f32 %v1341_v55, %v1290_v54  ;;  %v1841_v58 = vpop.f32.mrb[19].mxu0 }
 0x425   : > { %v1347_v59 = vmul.f32 %v1345_v56, %v1339_v52  ;;  %v1346_v60 = vmul.f32 %v1342_v57, %v1342_v57 }
 0x427   : > { %v1349_v61 = vmul.f32 0.044715, %v1347_v59  ;;  %v1348_v62 = vmul.f32 %v1346_v60, %v1342_v57 }
 0x429   : > { %v1351_v63 = vadd.f32 %v1349_v61, %v1339_v52  ;;  %v1350_v0 = vmul.f32 0.044715, %v1348_v62 }
 0x42b   : > { %v1353_v3 = vmul.f32 0.7978846, %v1351_v63  ;;  %v1352_v4 = vadd.f32 %v1350_v0, %v1342_v57 }
 0x42d   : > { %1977 = vtanh.f32 %v1353_v3  ;;  %v1354_v5 = vmul.f32 0.7978846, %v1352_v4 }
 0x42f   : > { %1979 = vtanh.f32 %v1354_v5 }
 0x437   : > { %v1978_v6 = vpop.eup %1977 }
 0x438   : > { %v1357_v7 = vadd.f32 1.0, %v1978_v6 }
 0x439   : > { %v1980_v8 = vpop.eup %1979 }
 0x43a   : > { %v1359_v9 = vmul.f32 0.5, %v1357_v7  ;;  %v1358_v10 = vadd.f32 1.0, %v1980_v8 }
 0x43c   : > { %v1360_v11 = vmul.f32 0.5, %v1358_v10  ;;  %v1361_v12 = vmul.f32 %v1359_v9, %v1339_v52 }
 0x43e   : > { %v1362_v13 = vmul.f32 %v1360_v11, %v1342_v57 }
 0x440   : > { %v1364_v14 = vpack.c.bf16 %v1362_v13, %v1361_v12 }
 0x442   : > { %1843 = vmatpush3.bf16.msra.mxu1 %v1364_v14 }
 0x445   : > { %1845 = vmatmul.mubr.msk.bf16.vlgmr.msra.gmra.mrb[16].mxu1 %vm1371_vm9, %v1363_v15 }
 0x518   : > { %v1409_v17 = vpop.f32.mrb[16].mxu1 }
 0x519   : > { %v1410_v18 = vadd.f32 %v1409_v17, %v1369_v16  ;;  %v1846_v19 = vpop.f32.mrb[17].mxu1 }
 0x51a   : > { %v1412_v21 = vpop.f32.mrb[18].mxu1 }
 0x51b   : > { %v1420_v22 = vmul.f32 %v1418_v20, %v1410_v18  ;;  %v1847_v23 = vpop.f32.mrb[19].mxu1 }
 0x51d   : > { %v1421_v24 = vadd.f32 %v1420_v22, %v2337_v30 }
 0x51f   : > { %1422 = vst [vmem:[%s299_s23] sm:$0xff] %v1421_v24 }
 0x520   : > { %2022 = shalt.err (!%p2019_p7)
}
 0x521   : > { %s2023_s18 = scalar_lea.hbm %s2358_s14, 128  ;;  %s2027_s21 = scalar_lea.hbm %s2407_s7, 256 }
 0x522   : > { %p2024_p8 = scmp.ne.s32.totalorder %s2358_s14, %s2023_s18  ;;  %p2028_p1 = scmp.lt.u32.totalorder %s2358_s14, %s2407_s7 }
 0x523   : > { %p2029_p0 = scmp.lt.u32.totalorder %s2027_s21, %s2023_s18  ;;  %p2031_p6 = scmp.lt.u32.totalorder %s2023_s18, %s2358_s14 }
 0x524   : > { %p2025_p11 = pnand %p2024_p8, %p2418_p9 }
 0x525   : > { %p2030_p5 = por %p2029_p0, %p2028_p1 }
 0x526   : > { %p2026_p13 = pneg %p2025_p11 }
 0x527   : > { %p2032_p10 = por %p2031_p6, %p2030_p5 }
 0x529   : > { %p2033_p12 = pnand %p2032_p10, %p2026_p13 }
 0x52b   : > { %2036 = shalt.err (!%p2033_p12)
}
 0x52c   : > { %1853 = dma.vmem_to_hbm [thread:$0]  (%p2418_p9), %s2360_s29, 128, %s2358_s14, %s1424_s17  }
 0x52d PF: > { %p1865_p2 = scmp.ge.s32.totalorder %s2075_s27, 2  ;;  %s1449_s8 = sand.u32 1, %s2063_s24  }
 0x52e   : > { %p2419_p3 = scmp.ne.s32.totalorder %s2412_s12, 0  ;;  %s1450_s9 = scalar_lea.sflag [#allocation4], %s1449_s8 }
 0x530   : > { %p1860_p4 = pnand %p1865_p2, %p2419_p3 }
 0x532   : > { %2058 = dma.done.wait (!%p1860_p4), %s1450_s9, 128  }
 0x533   : > { %2060 = vsyncadd (!%p1860_p4), %s1450_s9, 4294967168  ;;  %p18_p7 = scmp.ge.s32.totalorder %s2149_s30, 4   ;;  %s2420_s24 = smov %s2067_s25 }
 0x534   : > { %s2421_s25 = smov %s2071_s26  ;;  %s2422_s26 = smov %s2160_s10 }
 0x535   : > { %s2423_s27 = smov %s2149_s30  ;;  %20 = sbr.rel (!%p18_p7) target bundleno = 4 (0x4), region = 98 }
 0x53c   :  { %1455 = vsyncpa [#allocation3], 1 }
 0x53d   :  { %1457 = vsyncpa [#allocation3 + $0x1], 1 }
 0x53e   :  { %1458 = vsyncpa [#allocation4], 1 }
 0x53f   :  { %1460 = vsyncpa [#allocation4 + $0x1], 1 }

</bundles_post_ra>
